<compile_context>
chip_gen: v5e
topology: v5e:2x2
jax: 0.10.0
libtpu: 0.0.40
codegen_flags: <defaults>
</compile_context>

<pallas_src>
import functools

import jax
import jax.numpy as jnp
from jax.experimental import pallas as pl
from jax.experimental.pallas import tpu as pltpu


def _round_up(a, m):
    return (a + m - 1) // m * m


# ----------------------------------------------------------------------------
# Fused SAM kernel (one grid step == one batch image)
# ----------------------------------------------------------------------------
def _make_sam_kernel(n_feat, k, H, W, P, Wc, S_pad, front):
    """Builds the fused kernel closure over all static geometry.

    Layout: each image lives on a zero-padded (Hc, Wc) canvas, flattened to
    S = Hc*Wc lanes (padded to S_pad, a multiple of 128), with `front` extra
    zero lanes on both sides so every conv tap is an in-bounds static slice
    x_ext[:, front + dh*Wc + dw : ... + S_pad].
    """
    p1 = k // 2          # conv1 / conv3 padding
    p2 = 1               # conv2 is always 3x3, padding 1
    offs_k = [front + (i - p1) * Wc + (j - p1) for i in range(k) for j in range(k)]
    offs_3 = [front + (i - p2) * Wc + (j - p2) for i in range(3) for j in range(3)]

    def kernel(xext_ref, ximg_ref, mask_ref,
               w1_ref, w2_ref, w3_ref, b1_ref, b2_ref, b3_ref,
               out_ref, img_ref, img_scr):
        # ---- conv1(x): accumulate k*k shifted (Cout,Cin)x(Cin,S) matmuls ----
        x1 = None
        for t, off in enumerate(offs_k):
            slab = xext_ref[0, :, off:off + S_pad]              # (n_feat, S_pad) bf16
            d = jnp.dot(w1_ref[t], slab, preferred_element_type=jnp.float32)
            x1 = d if x1 is None else x1 + d
        x1 = x1 + b1_ref[...]                                   # f32 epilogue

        # ---- img = conv2(x) + bias + x_img, ring masked to zero -------------
        g2 = None
        for t, off in enumerate(offs_3):
            slab = xext_ref[0, :, off:off + S_pad]
            d = jnp.dot(w2_ref[t], slab, preferred_element_type=jnp.float32)
            g2 = d if g2 is None else g2 + d
        img = (g2 + b2_ref[...] + ximg_ref[0].astype(jnp.float32)) * mask_ref[...]
        img_ref[0] = img.astype(img_ref.dtype)

        # Stage the masked img into an extended VMEM scratch so conv3's taps
        # are in-bounds static slices (recomputed zero halo, no HBM round trip).
        img_scr[...] = jnp.zeros(img_scr.shape, img_scr.dtype)
        img_scr[:, front:front + S_pad] = img.astype(img_scr.dtype)

        # ---- conv3(img) ------------------------------------------------------
        g3 = None
        for t, off in enumerate(offs_k):
            slab = img_scr[:, off:off + S_pad]                  # (3, S_pad) bf16
            d = jnp.dot(w3_ref[t], slab, preferred_element_type=jnp.float32)
            g3 = d if g3 is None else g3 + d
        g3 = g3 + b3_ref[...]

        # ---- out = conv1(x) * sigmoid(conv3(img)) + x ------------------------
        x_res = xext_ref[0, :, front:front + S_pad].astype(jnp.float32)
        out_ref[0] = (x1 * jax.nn.sigmoid(g3) + x_res).astype(out_ref.dtype)

    return kernel


# ----------------------------------------------------------------------------
# SAM forward (wrapper: cheap 1x-sized layout plumbing + one pallas_call)
# ----------------------------------------------------------------------------
@functools.partial(jax.jit, static_argnames=("kernel_size",))
def sam_forward(params, x, x_img, kernel_size=3):
    B, C, H, W = x.shape
    k = kernel_size
    P = max(k // 2, 1)                  # canvas padding covers conv1/2/3
    Hc, Wc = H + 2 * P, W + 2 * P
    S = Hc * Wc
    S_pad = _round_up(S, 128)           # lane-dense outputs (multiple of 128)
    base = P * Wc + P                   # max |tap offset|
    front = _round_up(base, 128)        # aligned residual / staging offset
    L = front + S_pad + front

    f32, bf16 = jnp.float32, jnp.bfloat16

    # x -> zero-padded canvas, flattened per image, extended by `front` zero
    # lanes on each side.  (~1x-sized copies; no 9x patch tensor.)
    x_can = jnp.pad(x, ((0, 0), (0, 0), (P, P), (P, P))).reshape(B, C, S)
    x_ext = jnp.pad(x_can, ((0, 0), (0, 0), (front, L - front - S))).astype(bf16)

    ximg_can = jnp.pad(x_img, ((0, 0), (0, 0), (P, P), (P, P))).reshape(B, 3, S)
    ximg_can = jnp.pad(ximg_can, ((0, 0), (0, 0), (0, S_pad - S))).astype(f32)

    # Interior (non-ring) mask on the flattened canvas, shared by all images.
    idx = jnp.arange(S_pad)
    hh, ww = idx // Wc, idx % Wc
    mask = ((hh >= P) & (hh < P + H) & (ww >= P) & (ww < P + W) & (idx < S))
    mask = mask.astype(f32).reshape(1, S_pad)

    # Weights: (Cout, Cin, kh, kw) -> (kh*kw, Cout, Cin), bf16 matmul operands.
    w1t = params["w1"].transpose(2, 3, 0, 1).reshape(k * k, C, C).astype(bf16)
    w2t = params["w2"].transpose(2, 3, 0, 1).reshape(9, 3, C).astype(bf16)
    w3t = params["w3"].transpose(2, 3, 0, 1).reshape(k * k, C, 3).astype(bf16)
    b1 = params["b1"].reshape(C, 1).astype(f32)
    b2 = params["b2"].reshape(3, 1).astype(f32)
    b3 = params["b3"].reshape(C, 1).astype(f32)

    kernel = _make_sam_kernel(C, k, H, W, P, Wc, S_pad, front)

    out_can, img_can = pl.pallas_call(
        kernel,
        grid=(B,),
        in_specs=[
            pl.BlockSpec((1, C, L), lambda b: (b, 0, 0)),          # x_ext
            pl.BlockSpec((1, 3, S_pad), lambda b: (b, 0, 0)),      # x_img canvas
            pl.BlockSpec((1, S_pad), lambda b: (0, 0)),            # interior mask
            pl.BlockSpec((k * k, C, C), lambda b: (0, 0, 0)),      # w1 taps
            pl.BlockSpec((9, 3, C), lambda b: (0, 0, 0)),          # w2 taps
            pl.BlockSpec((k * k, C, 3), lambda b: (0, 0, 0)),      # w3 taps
            pl.BlockSpec((C, 1), lambda b: (0, 0)),                # b1
            pl.BlockSpec((3, 1), lambda b: (0, 0)),                # b2
            pl.BlockSpec((C, 1), lambda b: (0, 0)),                # b3
        ],
        out_specs=[
            pl.BlockSpec((1, C, S_pad), lambda b: (b, 0, 0)),      # out
            pl.BlockSpec((1, 3, S_pad), lambda b: (b, 0, 0)),      # img
        ],
        out_shape=[
            jax.ShapeDtypeStruct((B, C, S_pad), f32),
            jax.ShapeDtypeStruct((B, 3, S_pad), f32),
        ],
        scratch_shapes=[pltpu.VMEM((3, L), bf16)],                 # img halo stage
        compiler_params=pltpu.CompilerParams(
            dimension_semantics=("parallel",)),
    )(x_ext, ximg_can, mask, w1t, w2t, w3t, b1, b2, b3)

    # Extract the interior (original H x W) pixels from the canvases.
    out = out_can[:, :, :S].reshape(B, C, Hc, Wc)[:, :, P:P + H, P:P + W]
    img = img_can[:, :, :S].reshape(B, 3, Hc, Wc)[:, :, P:P + H, P:P + W]
    return out, img


# ----------------------------------------------------------------------------
# Reference (XLA convs) mirroring the kernel's bf16-operand / f32-accumulate
# numerics, for the correctness check.
# ----------------------------------------------------------------------------
def _conv_ref(x, w, b, padding):
    out = jax.lax.conv_general_dilated(
        x.astype(jnp.bfloat16), w.astype(jnp.bfloat16),
        window_strides=(1, 1),
        padding=[(padding, padding), (padding, padding)],
        dimension_numbers=("NCHW", "OIHW", "NCHW"),
        preferred_element_type=jnp.float32)
    return out + b.reshape(1, -1, 1, 1)


def sam_reference(params, x, x_img, kernel_size=3):
    k = kernel_size
    x1 = _conv_ref(x, params["w1"], params["b1"], k // 2)
    img = _conv_ref(x, params["w2"], params["b2"], 1) + x_img
    x2 = jax.nn.sigmoid(_conv_ref(img, params["w3"], params["b3"], k // 2))
    x_res = x.astype(jnp.bfloat16).astype(jnp.float32)   # kernel residual uses bf16 x
    return x1 * x2 + x_res, img


# ----------------------------------------------------------------------------
# Deterministic parameter init (shapes per the PyTorch __init__)
# ----------------------------------------------------------------------------
def init_sam(key, n_feat, kernel_size, bias):
    k1, k2, k3, kb1, kb2, kb3 = jax.random.split(key, 6)

    def _w(kk, cout, cin, ks):
        fan_in = cin * ks * ks
        return jax.random.normal(kk, (cout, cin, ks, ks), jnp.float32) * fan_in ** -0.5

    def _b(kk, cout):
        if bias:
            return 0.1 * jax.random.normal(kk, (cout, 1), jnp.float32)
        return jnp.zeros((cout, 1), jnp.float32)

    return {
        "w1": _w(k1, n_feat, n_feat, kernel_size), "b1": _b(kb1, n_feat),
        "w2": _w(k2, 3, n_feat, 3),                "b2": _b(kb2, 3),
        "w3": _w(k3, n_feat, 3, kernel_size),      "b3": _b(kb3, n_feat),
    }


# ----------------------------------------------------------------------------
if __name__ == "__main__":
    key = jax.random.PRNGKey(0)
    kp, kx, ki = jax.random.split(key, 3)

    N_FEAT, KSIZE, BIAS = 16, 3, True
    B, H, W = 2, 16, 16

    params = init_sam(kp, N_FEAT, KSIZE, BIAS)
    x = jax.random.normal(kx, (B, N_FEAT, H, W), jnp.float32)
    x_img = jax.random.normal(ki, (B, 3, H, W), jnp.float32)

    out, img = sam_forward(params, x, x_img, kernel_size=KSIZE)
    out, img = jax.block_until_ready((out, img))

    assert out.shape == (B, N_FEAT, H, W), out.shape
    assert img.shape == (B, 3, H, W), img.shape
    assert bool(jnp.all(jnp.isfinite(out))) and bool(jnp.all(jnp.isfinite(img)))

    # Numerical check against the bf16-matched XLA reference.
    r_out, r_img = sam_reference(params, x, x_img, kernel_size=KSIZE)
    assert jnp.allclose(img, r_img, atol=3e-2, rtol=3e-2), \
        float(jnp.max(jnp.abs(img - r_img)))
    assert jnp.allclose(out, r_out, atol=3e-2, rtol=3e-2), \
        float(jnp.max(jnp.abs(out - r_out)))

    print("KERNEL_OK")
</pallas_src>

<mosaic_0001>
module attributes {stable_mosaic.version = 11 : i64} {
  func.func @kernel(%arg0: i32, %arg1: memref<1x16x640xbf16, #tpu.memory_space<vmem>>, %arg2: memref<1x3x384xf32, #tpu.memory_space<vmem>>, %arg3: memref<1x384xf32, #tpu.memory_space<vmem>>, %arg4: memref<9x16x16xbf16, #tpu.memory_space<vmem>>, %arg5: memref<9x3x16xbf16, #tpu.memory_space<vmem>>, %arg6: memref<9x16x3xbf16, #tpu.memory_space<vmem>>, %arg7: memref<16x1xf32, #tpu.memory_space<vmem>>, %arg8: memref<3x1xf32, #tpu.memory_space<vmem>>, %arg9: memref<16x1xf32, #tpu.memory_space<vmem>>, %arg10: memref<1x16x384xf32, #tpu.memory_space<vmem>>, %arg11: memref<1x3x384xf32, #tpu.memory_space<vmem>>, %arg12: memref<3x640xbf16, #tpu.memory_space<vmem>>) attributes {dimension_semantics = [#tpu.dimension_semantics<parallel>], iteration_bounds = array<i64: 2>, scalar_prefetch = 0 : i64, scratch_operands = 1 : i64, tpu.core_type = #tpu.core_type<tc>, window_params = [{transform_indices = @transform_0, window_bounds = array<i64: 1, 16, 640>}, {transform_indices = @transform_1, window_bounds = array<i64: 1, 3, 384>}, {pipeline_mode = #tpu.pipeline_mode<synchronous>, transform_indices = @transform_2, window_bounds = array<i64: 1, 384>}, {pipeline_mode = #tpu.pipeline_mode<synchronous>, transform_indices = @transform_3, window_bounds = array<i64: 9, 16, 16>}, {pipeline_mode = #tpu.pipeline_mode<synchronous>, transform_indices = @transform_4, window_bounds = array<i64: 9, 3, 16>}, {pipeline_mode = #tpu.pipeline_mode<synchronous>, transform_indices = @transform_5, window_bounds = array<i64: 9, 16, 3>}, {pipeline_mode = #tpu.pipeline_mode<synchronous>, transform_indices = @transform_6, window_bounds = array<i64: 16, 1>}, {pipeline_mode = #tpu.pipeline_mode<synchronous>, transform_indices = @transform_7, window_bounds = array<i64: 3, 1>}, {pipeline_mode = #tpu.pipeline_mode<synchronous>, transform_indices = @transform_8, window_bounds = array<i64: 16, 1>}, {transform_indices = @transform_9, window_bounds = array<i64: 1, 16, 384>}, {transform_indices = @transform_10, window_bounds = array<i64: 1, 3, 384>}]} {
    %c0 = arith.constant 0 : index
    %c0_0 = arith.constant 0 : index
    %c109 = arith.constant 109 : index
    %0 = vector.load %arg1[%c0, %c0_0, %c109] : memref<1x16x640xbf16, #tpu.memory_space<vmem>>, vector<1x16x384xbf16>
    %1 = vector.shape_cast %0 : vector<1x16x384xbf16> to vector<16x384xbf16>
    %c0_1 = arith.constant 0 : index
    %c0_2 = arith.constant 0 : index
    %c0_3 = arith.constant 0 : index
    %2 = vector.load %arg4[%c0_1, %c0_2, %c0_3] : memref<9x16x16xbf16, #tpu.memory_space<vmem>>, vector<1x16x16xbf16>
    %3 = vector.shape_cast %2 : vector<1x16x16xbf16> to vector<16x16xbf16>
    %cst = arith.constant dense<0.000000e+00> : vector<16x384xf32>
    %4 = tpu.matmul %3, %1, %cst {dimension_numbers = #tpu.dot_dimension_numbers<[1], [0], [0], [1], [0, 0, 1, 1], [], []>} : vector<16x16xbf16>, vector<16x384xbf16>, vector<16x384xf32> -> vector<16x384xf32>
    %c0_4 = arith.constant 0 : index
    %c0_5 = arith.constant 0 : index
    %c110 = arith.constant 110 : index
    %5 = vector.load %arg1[%c0_4, %c0_5, %c110] : memref<1x16x640xbf16, #tpu.memory_space<vmem>>, vector<1x16x384xbf16>
    %6 = vector.shape_cast %5 : vector<1x16x384xbf16> to vector<16x384xbf16>
    %c1 = arith.constant 1 : index
    %c0_6 = arith.constant 0 : index
    %c0_7 = arith.constant 0 : index
    %7 = vector.load %arg4[%c1, %c0_6, %c0_7] : memref<9x16x16xbf16, #tpu.memory_space<vmem>>, vector<1x16x16xbf16>
    %8 = vector.shape_cast %7 : vector<1x16x16xbf16> to vector<16x16xbf16>
    %cst_8 = arith.constant dense<0.000000e+00> : vector<16x384xf32>
    %9 = tpu.matmul %8, %6, %cst_8 {dimension_numbers = #tpu.dot_dimension_numbers<[1], [0], [0], [1], [0, 0, 1, 1], [], []>} : vector<16x16xbf16>, vector<16x384xbf16>, vector<16x384xf32> -> vector<16x384xf32>
    %10 = arith.addf %4, %9 : vector<16x384xf32>
    %c0_9 = arith.constant 0 : index
    %c0_10 = arith.constant 0 : index
    %c111 = arith.constant 111 : index
    %11 = vector.load %arg1[%c0_9, %c0_10, %c111] : memref<1x16x640xbf16, #tpu.memory_space<vmem>>, vector<1x16x384xbf16>
    %12 = vector.shape_cast %11 : vector<1x16x384xbf16> to vector<16x384xbf16>
    %c2 = arith.constant 2 : index
    %c0_11 = arith.constant 0 : index
    %c0_12 = arith.constant 0 : index
    %13 = vector.load %arg4[%c2, %c0_11, %c0_12] : memref<9x16x16xbf16, #tpu.memory_space<vmem>>, vector<1x16x16xbf16>
    %14 = vector.shape_cast %13 : vector<1x16x16xbf16> to vector<16x16xbf16>
    %cst_13 = arith.constant dense<0.000000e+00> : vector<16x384xf32>
    %15 = tpu.matmul %14, %12, %cst_13 {dimension_numbers = #tpu.dot_dimension_numbers<[1], [0], [0], [1], [0, 0, 1, 1], [], []>} : vector<16x16xbf16>, vector<16x384xbf16>, vector<16x384xf32> -> vector<16x384xf32>
    %16 = arith.addf %10, %15 : vector<16x384xf32>
    %c0_14 = arith.constant 0 : index
    %c0_15 = arith.constant 0 : index
    %c127 = arith.constant 127 : index
    %17 = vector.load %arg1[%c0_14, %c0_15, %c127] : memref<1x16x640xbf16, #tpu.memory_space<vmem>>, vector<1x16x384xbf16>
    %18 = vector.shape_cast %17 : vector<1x16x384xbf16> to vector<16x384xbf16>
    %c3 = arith.constant 3 : index
    %c0_16 = arith.constant 0 : index
    %c0_17 = arith.constant 0 : index
    %19 = vector.load %arg4[%c3, %c0_16, %c0_17] : memref<9x16x16xbf16, #tpu.memory_space<vmem>>, vector<1x16x16xbf16>
    %20 = vector.shape_cast %19 : vector<1x16x16xbf16> to vector<16x16xbf16>
    %cst_18 = arith.constant dense<0.000000e+00> : vector<16x384xf32>
    %21 = tpu.matmul %20, %18, %cst_18 {dimension_numbers = #tpu.dot_dimension_numbers<[1], [0], [0], [1], [0, 0, 1, 1], [], []>} : vector<16x16xbf16>, vector<16x384xbf16>, vector<16x384xf32> -> vector<16x384xf32>
    %22 = arith.addf %16, %21 : vector<16x384xf32>
    %c0_19 = arith.constant 0 : index
    %c0_20 = arith.constant 0 : index
    %c128 = arith.constant 128 : index
    %23 = vector.load %arg1[%c0_19, %c0_20, %c128] : memref<1x16x640xbf16, #tpu.memory_space<vmem>>, vector<1x16x384xbf16>
    %24 = vector.shape_cast %23 : vector<1x16x384xbf16> to vector<16x384xbf16>
    %c4 = arith.constant 4 : index
    %c0_21 = arith.constant 0 : index
    %c0_22 = arith.constant 0 : index
    %25 = vector.load %arg4[%c4, %c0_21, %c0_22] : memref<9x16x16xbf16, #tpu.memory_space<vmem>>, vector<1x16x16xbf16>
    %26 = vector.shape_cast %25 : vector<1x16x16xbf16> to vector<16x16xbf16>
    %cst_23 = arith.constant dense<0.000000e+00> : vector<16x384xf32>
    %27 = tpu.matmul %26, %24, %cst_23 {dimension_numbers = #tpu.dot_dimension_numbers<[1], [0], [0], [1], [0, 0, 1, 1], [], []>} : vector<16x16xbf16>, vector<16x384xbf16>, vector<16x384xf32> -> vector<16x384xf32>
    %28 = arith.addf %22, %27 : vector<16x384xf32>
    %c0_24 = arith.constant 0 : index
    %c0_25 = arith.constant 0 : index
    %c129 = arith.constant 129 : index
    %29 = vector.load %arg1[%c0_24, %c0_25, %c129] : memref<1x16x640xbf16, #tpu.memory_space<vmem>>, vector<1x16x384xbf16>
    %30 = vector.shape_cast %29 : vector<1x16x384xbf16> to vector<16x384xbf16>
    %c5 = arith.constant 5 : index
    %c0_26 = arith.constant 0 : index
    %c0_27 = arith.constant 0 : index
    %31 = vector.load %arg4[%c5, %c0_26, %c0_27] : memref<9x16x16xbf16, #tpu.memory_space<vmem>>, vector<1x16x16xbf16>
    %32 = vector.shape_cast %31 : vector<1x16x16xbf16> to vector<16x16xbf16>
    %cst_28 = arith.constant dense<0.000000e+00> : vector<16x384xf32>
    %33 = tpu.matmul %32, %30, %cst_28 {dimension_numbers = #tpu.dot_dimension_numbers<[1], [0], [0], [1], [0, 0, 1, 1], [], []>} : vector<16x16xbf16>, vector<16x384xbf16>, vector<16x384xf32> -> vector<16x384xf32>
    %34 = arith.addf %28, %33 : vector<16x384xf32>
    %c0_29 = arith.constant 0 : index
    %c0_30 = arith.constant 0 : index
    %c145 = arith.constant 145 : index
    %35 = vector.load %arg1[%c0_29, %c0_30, %c145] : memref<1x16x640xbf16, #tpu.memory_space<vmem>>, vector<1x16x384xbf16>
    %36 = vector.shape_cast %35 : vector<1x16x384xbf16> to vector<16x384xbf16>
    %c6 = arith.constant 6 : index
    %c0_31 = arith.constant 0 : index
    %c0_32 = arith.constant 0 : index
    %37 = vector.load %arg4[%c6, %c0_31, %c0_32] : memref<9x16x16xbf16, #tpu.memory_space<vmem>>, vector<1x16x16xbf16>
    %38 = vector.shape_cast %37 : vector<1x16x16xbf16> to vector<16x16xbf16>
    %cst_33 = arith.constant dense<0.000000e+00> : vector<16x384xf32>
    %39 = tpu.matmul %38, %36, %cst_33 {dimension_numbers = #tpu.dot_dimension_numbers<[1], [0], [0], [1], [0, 0, 1, 1], [], []>} : vector<16x16xbf16>, vector<16x384xbf16>, vector<16x384xf32> -> vector<16x384xf32>
    %40 = arith.addf %34, %39 : vector<16x384xf32>
    %c0_34 = arith.constant 0 : index
    %c0_35 = arith.constant 0 : index
    %c146 = arith.constant 146 : index
    %41 = vector.load %arg1[%c0_34, %c0_35, %c146] : memref<1x16x640xbf16, #tpu.memory_space<vmem>>, vector<1x16x384xbf16>
    %42 = vector.shape_cast %41 : vector<1x16x384xbf16> to vector<16x384xbf16>
    %c7 = arith.constant 7 : index
    %c0_36 = arith.constant 0 : index
    %c0_37 = arith.constant 0 : index
    %43 = vector.load %arg4[%c7, %c0_36, %c0_37] : memref<9x16x16xbf16, #tpu.memory_space<vmem>>, vector<1x16x16xbf16>
    %44 = vector.shape_cast %43 : vector<1x16x16xbf16> to vector<16x16xbf16>
    %cst_38 = arith.constant dense<0.000000e+00> : vector<16x384xf32>
    %45 = tpu.matmul %44, %42, %cst_38 {dimension_numbers = #tpu.dot_dimension_numbers<[1], [0], [0], [1], [0, 0, 1, 1], [], []>} : vector<16x16xbf16>, vector<16x384xbf16>, vector<16x384xf32> -> vector<16x384xf32>
    %46 = arith.addf %40, %45 : vector<16x384xf32>
    %c0_39 = arith.constant 0 : index
    %c0_40 = arith.constant 0 : index
    %c147 = arith.constant 147 : index
    %47 = vector.load %arg1[%c0_39, %c0_40, %c147] : memref<1x16x640xbf16, #tpu.memory_space<vmem>>, vector<1x16x384xbf16>
    %48 = vector.shape_cast %47 : vector<1x16x384xbf16> to vector<16x384xbf16>
    %c8 = arith.constant 8 : index
    %c0_41 = arith.constant 0 : index
    %c0_42 = arith.constant 0 : index
    %49 = vector.load %arg4[%c8, %c0_41, %c0_42] : memref<9x16x16xbf16, #tpu.memory_space<vmem>>, vector<1x16x16xbf16>
    %50 = vector.shape_cast %49 : vector<1x16x16xbf16> to vector<16x16xbf16>
    %cst_43 = arith.constant dense<0.000000e+00> : vector<16x384xf32>
    %51 = tpu.matmul %50, %48, %cst_43 {dimension_numbers = #tpu.dot_dimension_numbers<[1], [0], [0], [1], [0, 0, 1, 1], [], []>} : vector<16x16xbf16>, vector<16x384xbf16>, vector<16x384xf32> -> vector<16x384xf32>
    %52 = arith.addf %46, %51 : vector<16x384xf32>
    %c0_44 = arith.constant 0 : index
    %c0_45 = arith.constant 0 : index
    %53 = vector.load %arg7[%c0_44, %c0_45] : memref<16x1xf32, #tpu.memory_space<vmem>>, vector<16x1xf32>
    %54 = vector.broadcast %53 : vector<16x1xf32> to vector<16x384xf32>
    %55 = arith.addf %52, %54 : vector<16x384xf32>
    %c0_46 = arith.constant 0 : index
    %c0_47 = arith.constant 0 : index
    %c109_48 = arith.constant 109 : index
    %56 = vector.load %arg1[%c0_46, %c0_47, %c109_48] : memref<1x16x640xbf16, #tpu.memory_space<vmem>>, vector<1x16x384xbf16>
    %57 = vector.shape_cast %56 : vector<1x16x384xbf16> to vector<16x384xbf16>
    %c0_49 = arith.constant 0 : index
    %c0_50 = arith.constant 0 : index
    %c0_51 = arith.constant 0 : index
    %58 = vector.load %arg5[%c0_49, %c0_50, %c0_51] : memref<9x3x16xbf16, #tpu.memory_space<vmem>>, vector<1x3x16xbf16>
    %59 = vector.shape_cast %58 : vector<1x3x16xbf16> to vector<3x16xbf16>
    %cst_52 = arith.constant dense<0.000000e+00> : vector<3x384xf32>
    %60 = tpu.matmul %59, %57, %cst_52 {dimension_numbers = #tpu.dot_dimension_numbers<[1], [0], [0], [1], [0, 0, 1, 1], [], []>} : vector<3x16xbf16>, vector<16x384xbf16>, vector<3x384xf32> -> vector<3x384xf32>
    %c0_53 = arith.constant 0 : index
    %c0_54 = arith.constant 0 : index
    %c110_55 = arith.constant 110 : index
    %61 = vector.load %arg1[%c0_53, %c0_54, %c110_55] : memref<1x16x640xbf16, #tpu.memory_space<vmem>>, vector<1x16x384xbf16>
    %62 = vector.shape_cast %61 : vector<1x16x384xbf16> to vector<16x384xbf16>
    %c1_56 = arith.constant 1 : index
    %c0_57 = arith.constant 0 : index
    %c0_58 = arith.constant 0 : index
    %63 = vector.load %arg5[%c1_56, %c0_57, %c0_58] : memref<9x3x16xbf16, #tpu.memory_space<vmem>>, vector<1x3x16xbf16>
    %64 = vector.shape_cast %63 : vector<1x3x16xbf16> to vector<3x16xbf16>
    %cst_59 = arith.constant dense<0.000000e+00> : vector<3x384xf32>
    %65 = tpu.matmul %64, %62, %cst_59 {dimension_numbers = #tpu.dot_dimension_numbers<[1], [0], [0], [1], [0, 0, 1, 1], [], []>} : vector<3x16xbf16>, vector<16x384xbf16>, vector<3x384xf32> -> vector<3x384xf32>
    %66 = arith.addf %60, %65 : vector<3x384xf32>
    %c0_60 = arith.constant 0 : index
    %c0_61 = arith.constant 0 : index
    %c111_62 = arith.constant 111 : index
    %67 = vector.load %arg1[%c0_60, %c0_61, %c111_62] : memref<1x16x640xbf16, #tpu.memory_space<vmem>>, vector<1x16x384xbf16>
    %68 = vector.shape_cast %67 : vector<1x16x384xbf16> to vector<16x384xbf16>
    %c2_63 = arith.constant 2 : index
    %c0_64 = arith.constant 0 : index
    %c0_65 = arith.constant 0 : index
    %69 = vector.load %arg5[%c2_63, %c0_64, %c0_65] : memref<9x3x16xbf16, #tpu.memory_space<vmem>>, vector<1x3x16xbf16>
    %70 = vector.shape_cast %69 : vector<1x3x16xbf16> to vector<3x16xbf16>
    %cst_66 = arith.constant dense<0.000000e+00> : vector<3x384xf32>
    %71 = tpu.matmul %70, %68, %cst_66 {dimension_numbers = #tpu.dot_dimension_numbers<[1], [0], [0], [1], [0, 0, 1, 1], [], []>} : vector<3x16xbf16>, vector<16x384xbf16>, vector<3x384xf32> -> vector<3x384xf32>
    %72 = arith.addf %66, %71 : vector<3x384xf32>
    %c0_67 = arith.constant 0 : index
    %c0_68 = arith.constant 0 : index
    %c127_69 = arith.constant 127 : index
    %73 = vector.load %arg1[%c0_67, %c0_68, %c127_69] : memref<1x16x640xbf16, #tpu.memory_space<vmem>>, vector<1x16x384xbf16>
    %74 = vector.shape_cast %73 : vector<1x16x384xbf16> to vector<16x384xbf16>
    %c3_70 = arith.constant 3 : index
    %c0_71 = arith.constant 0 : index
    %c0_72 = arith.constant 0 : index
    %75 = vector.load %arg5[%c3_70, %c0_71, %c0_72] : memref<9x3x16xbf16, #tpu.memory_space<vmem>>, vector<1x3x16xbf16>
    %76 = vector.shape_cast %75 : vector<1x3x16xbf16> to vector<3x16xbf16>
    %cst_73 = arith.constant dense<0.000000e+00> : vector<3x384xf32>
    %77 = tpu.matmul %76, %74, %cst_73 {dimension_numbers = #tpu.dot_dimension_numbers<[1], [0], [0], [1], [0, 0, 1, 1], [], []>} : vector<3x16xbf16>, vector<16x384xbf16>, vector<3x384xf32> -> vector<3x384xf32>
    %78 = arith.addf %72, %77 : vector<3x384xf32>
    %c0_74 = arith.constant 0 : index
    %c0_75 = arith.constant 0 : index
    %c128_76 = arith.constant 128 : index
    %79 = vector.load %arg1[%c0_74, %c0_75, %c128_76] : memref<1x16x640xbf16, #tpu.memory_space<vmem>>, vector<1x16x384xbf16>
    %80 = vector.shape_cast %79 : vector<1x16x384xbf16> to vector<16x384xbf16>
    %c4_77 = arith.constant 4 : index
    %c0_78 = arith.constant 0 : index
    %c0_79 = arith.constant 0 : index
    %81 = vector.load %arg5[%c4_77, %c0_78, %c0_79] : memref<9x3x16xbf16, #tpu.memory_space<vmem>>, vector<1x3x16xbf16>
    %82 = vector.shape_cast %81 : vector<1x3x16xbf16> to vector<3x16xbf16>
    %cst_80 = arith.constant dense<0.000000e+00> : vector<3x384xf32>
    %83 = tpu.matmul %82, %80, %cst_80 {dimension_numbers = #tpu.dot_dimension_numbers<[1], [0], [0], [1], [0, 0, 1, 1], [], []>} : vector<3x16xbf16>, vector<16x384xbf16>, vector<3x384xf32> -> vector<3x384xf32>
    %84 = arith.addf %78, %83 : vector<3x384xf32>
    %c0_81 = arith.constant 0 : index
    %c0_82 = arith.constant 0 : index
    %c129_83 = arith.constant 129 : index
    %85 = vector.load %arg1[%c0_81, %c0_82, %c129_83] : memref<1x16x640xbf16, #tpu.memory_space<vmem>>, vector<1x16x384xbf16>
    %86 = vector.shape_cast %85 : vector<1x16x384xbf16> to vector<16x384xbf16>
    %c5_84 = arith.constant 5 : index
    %c0_85 = arith.constant 0 : index
    %c0_86 = arith.constant 0 : index
    %87 = vector.load %arg5[%c5_84, %c0_85, %c0_86] : memref<9x3x16xbf16, #tpu.memory_space<vmem>>, vector<1x3x16xbf16>
    %88 = vector.shape_cast %87 : vector<1x3x16xbf16> to vector<3x16xbf16>
    %cst_87 = arith.constant dense<0.000000e+00> : vector<3x384xf32>
    %89 = tpu.matmul %88, %86, %cst_87 {dimension_numbers = #tpu.dot_dimension_numbers<[1], [0], [0], [1], [0, 0, 1, 1], [], []>} : vector<3x16xbf16>, vector<16x384xbf16>, vector<3x384xf32> -> vector<3x384xf32>
    %90 = arith.addf %84, %89 : vector<3x384xf32>
    %c0_88 = arith.constant 0 : index
    %c0_89 = arith.constant 0 : index
    %c145_90 = arith.constant 145 : index
    %91 = vector.load %arg1[%c0_88, %c0_89, %c145_90] : memref<1x16x640xbf16, #tpu.memory_space<vmem>>, vector<1x16x384xbf16>
    %92 = vector.shape_cast %91 : vector<1x16x384xbf16> to vector<16x384xbf16>
    %c6_91 = arith.constant 6 : index
    %c0_92 = arith.constant 0 : index
    %c0_93 = arith.constant 0 : index
    %93 = vector.load %arg5[%c6_91, %c0_92, %c0_93] : memref<9x3x16xbf16, #tpu.memory_space<vmem>>, vector<1x3x16xbf16>
    %94 = vector.shape_cast %93 : vector<1x3x16xbf16> to vector<3x16xbf16>
    %cst_94 = arith.constant dense<0.000000e+00> : vector<3x384xf32>
    %95 = tpu.matmul %94, %92, %cst_94 {dimension_numbers = #tpu.dot_dimension_numbers<[1], [0], [0], [1], [0, 0, 1, 1], [], []>} : vector<3x16xbf16>, vector<16x384xbf16>, vector<3x384xf32> -> vector<3x384xf32>
    %96 = arith.addf %90, %95 : vector<3x384xf32>
    %c0_95 = arith.constant 0 : index
    %c0_96 = arith.constant 0 : index
    %c146_97 = arith.constant 146 : index
    %97 = vector.load %arg1[%c0_95, %c0_96, %c146_97] : memref<1x16x640xbf16, #tpu.memory_space<vmem>>, vector<1x16x384xbf16>
    %98 = vector.shape_cast %97 : vector<1x16x384xbf16> to vector<16x384xbf16>
    %c7_98 = arith.constant 7 : index
    %c0_99 = arith.constant 0 : index
    %c0_100 = arith.constant 0 : index
    %99 = vector.load %arg5[%c7_98, %c0_99, %c0_100] : memref<9x3x16xbf16, #tpu.memory_space<vmem>>, vector<1x3x16xbf16>
    %100 = vector.shape_cast %99 : vector<1x3x16xbf16> to vector<3x16xbf16>
    %cst_101 = arith.constant dense<0.000000e+00> : vector<3x384xf32>
    %101 = tpu.matmul %100, %98, %cst_101 {dimension_numbers = #tpu.dot_dimension_numbers<[1], [0], [0], [1], [0, 0, 1, 1], [], []>} : vector<3x16xbf16>, vector<16x384xbf16>, vector<3x384xf32> -> vector<3x384xf32>
    %102 = arith.addf %96, %101 : vector<3x384xf32>
    %c0_102 = arith.constant 0 : index
    %c0_103 = arith.constant 0 : index
    %c147_104 = arith.constant 147 : index
    %103 = vector.load %arg1[%c0_102, %c0_103, %c147_104] : memref<1x16x640xbf16, #tpu.memory_space<vmem>>, vector<1x16x384xbf16>
    %104 = vector.shape_cast %103 : vector<1x16x384xbf16> to vector<16x384xbf16>
    %c8_105 = arith.constant 8 : index
    %c0_106 = arith.constant 0 : index
    %c0_107 = arith.constant 0 : index
    %105 = vector.load %arg5[%c8_105, %c0_106, %c0_107] : memref<9x3x16xbf16, #tpu.memory_space<vmem>>, vector<1x3x16xbf16>
    %106 = vector.shape_cast %105 : vector<1x3x16xbf16> to vector<3x16xbf16>
    %cst_108 = arith.constant dense<0.000000e+00> : vector<3x384xf32>
    %107 = tpu.matmul %106, %104, %cst_108 {dimension_numbers = #tpu.dot_dimension_numbers<[1], [0], [0], [1], [0, 0, 1, 1], [], []>} : vector<3x16xbf16>, vector<16x384xbf16>, vector<3x384xf32> -> vector<3x384xf32>
    %108 = arith.addf %102, %107 : vector<3x384xf32>
    %c0_109 = arith.constant 0 : index
    %c0_110 = arith.constant 0 : index
    %109 = vector.load %arg8[%c0_109, %c0_110] : memref<3x1xf32, #tpu.memory_space<vmem>>, vector<3x1xf32>
    %110 = vector.broadcast %109 : vector<3x1xf32> to vector<3x384xf32>
    %111 = arith.addf %108, %110 : vector<3x384xf32>
    %c0_111 = arith.constant 0 : index
    %c0_112 = arith.constant 0 : index
    %c0_113 = arith.constant 0 : index
    %112 = vector.load %arg2[%c0_111, %c0_112, %c0_113] : memref<1x3x384xf32, #tpu.memory_space<vmem>>, vector<1x3x384xf32>
    %113 = vector.shape_cast %112 : vector<1x3x384xf32> to vector<3x384xf32>
    %114 = arith.addf %111, %113 : vector<3x384xf32>
    %c0_114 = arith.constant 0 : index
    %c0_115 = arith.constant 0 : index
    %115 = vector.load %arg3[%c0_114, %c0_115] : memref<1x384xf32, #tpu.memory_space<vmem>>, vector<1x384xf32>
    %116 = vector.broadcast %115 : vector<1x384xf32> to vector<3x384xf32>
    %117 = arith.mulf %114, %116 : vector<3x384xf32>
    %c0_116 = arith.constant 0 : index
    %c0_117 = arith.constant 0 : index
    %c0_118 = arith.constant 0 : index
    %118 = vector.load %arg11[%c0_116, %c0_117, %c0_118] : memref<1x3x384xf32, #tpu.memory_space<vmem>>, vector<1x3x384xf32>
    %119 = vector.shape_cast %118 : vector<1x3x384xf32> to vector<3x384xf32>
    %120 = vector.shape_cast %117 : vector<3x384xf32> to vector<1x3x384xf32>
    tpu.vector_store %arg11[%c0_116, %c0_117, %c0_118], %120 {strides = array<i32>} : memref<1x3x384xf32, #tpu.memory_space<vmem>>, vector<1x3x384xf32>,
    %cst_119 = arith.constant 0.000000e+00 : bf16
    %121 = vector.broadcast %cst_119 : bf16 to vector<3x640xbf16>
    %c0_120 = arith.constant 0 : index
    %c0_121 = arith.constant 0 : index
    %122 = vector.load %arg12[%c0_120, %c0_121] : memref<3x640xbf16, #tpu.memory_space<vmem>>, vector<3x640xbf16>
    tpu.vector_store %arg12[%c0_120, %c0_121], %121 {strides = array<i32>} : memref<3x640xbf16, #tpu.memory_space<vmem>>, vector<3x640xbf16>,
    %123 = arith.truncf %117 : vector<3x384xf32> to vector<3x384xbf16>
    %c0_122 = arith.constant 0 : index
    %c128_123 = arith.constant 128 : index
    %124 = vector.load %arg12[%c0_122, %c128_123] : memref<3x640xbf16, #tpu.memory_space<vmem>>, vector<3x384xbf16>
    tpu.vector_store %arg12[%c0_122, %c128_123], %123 {strides = array<i32>} : memref<3x640xbf16, #tpu.memory_space<vmem>>, vector<3x384xbf16>,
    %c0_124 = arith.constant 0 : index
    %c109_125 = arith.constant 109 : index
    %125 = vector.load %arg12[%c0_124, %c109_125] : memref<3x640xbf16, #tpu.memory_space<vmem>>, vector<3x384xbf16>
    %c0_126 = arith.constant 0 : index
    %c0_127 = arith.constant 0 : index
    %c0_128 = arith.constant 0 : index
    %126 = vector.load %arg6[%c0_126, %c0_127, %c0_128] : memref<9x16x3xbf16, #tpu.memory_space<vmem>>, vector<1x16x3xbf16>
    %127 = vector.shape_cast %126 : vector<1x16x3xbf16> to vector<16x3xbf16>
    %cst_129 = arith.constant dense<0.000000e+00> : vector<16x384xf32>
    %128 = tpu.matmul %127, %125, %cst_129 {dimension_numbers = #tpu.dot_dimension_numbers<[1], [0], [0], [1], [0, 0, 1, 1], [], []>} : vector<16x3xbf16>, vector<3x384xbf16>, vector<16x384xf32> -> vector<16x384xf32>
    %c0_130 = arith.constant 0 : index
    %c110_131 = arith.constant 110 : index
    %129 = vector.load %arg12[%c0_130, %c110_131] : memref<3x640xbf16, #tpu.memory_space<vmem>>, vector<3x384xbf16>
    %c1_132 = arith.constant 1 : index
    %c0_133 = arith.constant 0 : index
    %c0_134 = arith.constant 0 : index
    %130 = vector.load %arg6[%c1_132, %c0_133, %c0_134] : memref<9x16x3xbf16, #tpu.memory_space<vmem>>, vector<1x16x3xbf16>
    %131 = vector.shape_cast %130 : vector<1x16x3xbf16> to vector<16x3xbf16>
    %cst_135 = arith.constant dense<0.000000e+00> : vector<16x384xf32>
    %132 = tpu.matmul %131, %129, %cst_135 {dimension_numbers = #tpu.dot_dimension_numbers<[1], [0], [0], [1], [0, 0, 1, 1], [], []>} : vector<16x3xbf16>, vector<3x384xbf16>, vector<16x384xf32> -> vector<16x384xf32>
    %133 = arith.addf %128, %132 : vector<16x384xf32>
    %c0_136 = arith.constant 0 : index
    %c111_137 = arith.constant 111 : index
    %134 = vector.load %arg12[%c0_136, %c111_137] : memref<3x640xbf16, #tpu.memory_space<vmem>>, vector<3x384xbf16>
    %c2_138 = arith.constant 2 : index
    %c0_139 = arith.constant 0 : index
    %c0_140 = arith.constant 0 : index
    %135 = vector.load %arg6[%c2_138, %c0_139, %c0_140] : memref<9x16x3xbf16, #tpu.memory_space<vmem>>, vector<1x16x3xbf16>
    %136 = vector.shape_cast %135 : vector<1x16x3xbf16> to vector<16x3xbf16>
    %cst_141 = arith.constant dense<0.000000e+00> : vector<16x384xf32>
    %137 = tpu.matmul %136, %134, %cst_141 {dimension_numbers = #tpu.dot_dimension_numbers<[1], [0], [0], [1], [0, 0, 1, 1], [], []>} : vector<16x3xbf16>, vector<3x384xbf16>, vector<16x384xf32> -> vector<16x384xf32>
    %138 = arith.addf %133, %137 : vector<16x384xf32>
    %c0_142 = arith.constant 0 : index
    %c127_143 = arith.constant 127 : index
    %139 = vector.load %arg12[%c0_142, %c127_143] : memref<3x640xbf16, #tpu.memory_space<vmem>>, vector<3x384xbf16>
    %c3_144 = arith.constant 3 : index
    %c0_145 = arith.constant 0 : index
    %c0_146 = arith.constant 0 : index
    %140 = vector.load %arg6[%c3_144, %c0_145, %c0_146] : memref<9x16x3xbf16, #tpu.memory_space<vmem>>, vector<1x16x3xbf16>
    %141 = vector.shape_cast %140 : vector<1x16x3xbf16> to vector<16x3xbf16>
    %cst_147 = arith.constant dense<0.000000e+00> : vector<16x384xf32>
    %142 = tpu.matmul %141, %139, %cst_147 {dimension_numbers = #tpu.dot_dimension_numbers<[1], [0], [0], [1], [0, 0, 1, 1], [], []>} : vector<16x3xbf16>, vector<3x384xbf16>, vector<16x384xf32> -> vector<16x384xf32>
    %143 = arith.addf %138, %142 : vector<16x384xf32>
    %c0_148 = arith.constant 0 : index
    %c128_149 = arith.constant 128 : index
    %144 = vector.load %arg12[%c0_148, %c128_149] : memref<3x640xbf16, #tpu.memory_space<vmem>>, vector<3x384xbf16>
    %c4_150 = arith.constant 4 : index
    %c0_151 = arith.constant 0 : index
    %c0_152 = arith.constant 0 : index
    %145 = vector.load %arg6[%c4_150, %c0_151, %c0_152] : memref<9x16x3xbf16, #tpu.memory_space<vmem>>, vector<1x16x3xbf16>
    %146 = vector.shape_cast %145 : vector<1x16x3xbf16> to vector<16x3xbf16>
    %cst_153 = arith.constant dense<0.000000e+00> : vector<16x384xf32>
    %147 = tpu.matmul %146, %144, %cst_153 {dimension_numbers = #tpu.dot_dimension_numbers<[1], [0], [0], [1], [0, 0, 1, 1], [], []>} : vector<16x3xbf16>, vector<3x384xbf16>, vector<16x384xf32> -> vector<16x384xf32>
    %148 = arith.addf %143, %147 : vector<16x384xf32>
    %c0_154 = arith.constant 0 : index
    %c129_155 = arith.constant 129 : index
    %149 = vector.load %arg12[%c0_154, %c129_155] : memref<3x640xbf16, #tpu.memory_space<vmem>>, vector<3x384xbf16>
    %c5_156 = arith.constant 5 : index
    %c0_157 = arith.constant 0 : index
    %c0_158 = arith.constant 0 : index
    %150 = vector.load %arg6[%c5_156, %c0_157, %c0_158] : memref<9x16x3xbf16, #tpu.memory_space<vmem>>, vector<1x16x3xbf16>
    %151 = vector.shape_cast %150 : vector<1x16x3xbf16> to vector<16x3xbf16>
    %cst_159 = arith.constant dense<0.000000e+00> : vector<16x384xf32>
    %152 = tpu.matmul %151, %149, %cst_159 {dimension_numbers = #tpu.dot_dimension_numbers<[1], [0], [0], [1], [0, 0, 1, 1], [], []>} : vector<16x3xbf16>, vector<3x384xbf16>, vector<16x384xf32> -> vector<16x384xf32>
    %153 = arith.addf %148, %152 : vector<16x384xf32>
    %c0_160 = arith.constant 0 : index
    %c145_161 = arith.constant 145 : index
    %154 = vector.load %arg12[%c0_160, %c145_161] : memref<3x640xbf16, #tpu.memory_space<vmem>>, vector<3x384xbf16>
    %c6_162 = arith.constant 6 : index
    %c0_163 = arith.constant 0 : index
    %c0_164 = arith.constant 0 : index
    %155 = vector.load %arg6[%c6_162, %c0_163, %c0_164] : memref<9x16x3xbf16, #tpu.memory_space<vmem>>, vector<1x16x3xbf16>
    %156 = vector.shape_cast %155 : vector<1x16x3xbf16> to vector<16x3xbf16>
    %cst_165 = arith.constant dense<0.000000e+00> : vector<16x384xf32>
    %157 = tpu.matmul %156, %154, %cst_165 {dimension_numbers = #tpu.dot_dimension_numbers<[1], [0], [0], [1], [0, 0, 1, 1], [], []>} : vector<16x3xbf16>, vector<3x384xbf16>, vector<16x384xf32> -> vector<16x384xf32>
    %158 = arith.addf %153, %157 : vector<16x384xf32>
    %c0_166 = arith.constant 0 : index
    %c146_167 = arith.constant 146 : index
    %159 = vector.load %arg12[%c0_166, %c146_167] : memref<3x640xbf16, #tpu.memory_space<vmem>>, vector<3x384xbf16>
    %c7_168 = arith.constant 7 : index
    %c0_169 = arith.constant 0 : index
    %c0_170 = arith.constant 0 : index
    %160 = vector.load %arg6[%c7_168, %c0_169, %c0_170] : memref<9x16x3xbf16, #tpu.memory_space<vmem>>, vector<1x16x3xbf16>
    %161 = vector.shape_cast %160 : vector<1x16x3xbf16> to vector<16x3xbf16>
    %cst_171 = arith.constant dense<0.000000e+00> : vector<16x384xf32>
    %162 = tpu.matmul %161, %159, %cst_171 {dimension_numbers = #tpu.dot_dimension_numbers<[1], [0], [0], [1], [0, 0, 1, 1], [], []>} : vector<16x3xbf16>, vector<3x384xbf16>, vector<16x384xf32> -> vector<16x384xf32>
    %163 = arith.addf %158, %162 : vector<16x384xf32>
    %c0_172 = arith.constant 0 : index
    %c147_173 = arith.constant 147 : index
    %164 = vector.load %arg12[%c0_172, %c147_173] : memref<3x640xbf16, #tpu.memory_space<vmem>>, vector<3x384xbf16>
    %c8_174 = arith.constant 8 : index
    %c0_175 = arith.constant 0 : index
    %c0_176 = arith.constant 0 : index
    %165 = vector.load %arg6[%c8_174, %c0_175, %c0_176] : memref<9x16x3xbf16, #tpu.memory_space<vmem>>, vector<1x16x3xbf16>
    %166 = vector.shape_cast %165 : vector<1x16x3xbf16> to vector<16x3xbf16>
    %cst_177 = arith.constant dense<0.000000e+00> : vector<16x384xf32>
    %167 = tpu.matmul %166, %164, %cst_177 {dimension_numbers = #tpu.dot_dimension_numbers<[1], [0], [0], [1], [0, 0, 1, 1], [], []>} : vector<16x3xbf16>, vector<3x384xbf16>, vector<16x384xf32> -> vector<16x384xf32>
    %168 = arith.addf %163, %167 : vector<16x384xf32>
    %c0_178 = arith.constant 0 : index
    %c0_179 = arith.constant 0 : index
    %169 = vector.load %arg9[%c0_178, %c0_179] : memref<16x1xf32, #tpu.memory_space<vmem>>, vector<16x1xf32>
    %170 = vector.broadcast %169 : vector<16x1xf32> to vector<16x384xf32>
    %171 = arith.addf %168, %170 : vector<16x384xf32>
    %c0_180 = arith.constant 0 : index
    %c0_181 = arith.constant 0 : index
    %c128_182 = arith.constant 128 : index
    %172 = vector.load %arg1[%c0_180, %c0_181, %c128_182] : memref<1x16x640xbf16, #tpu.memory_space<vmem>>, vector<1x16x384xbf16>
    %173 = vector.shape_cast %172 : vector<1x16x384xbf16> to vector<16x384xbf16>
    %174 = arith.extf %173 : vector<16x384xbf16> to vector<16x384xf32>
    %175 = arith.negf %171 : vector<16x384xf32>
    %176 = math.exp %175 : vector<16x384xf32>
    %cst_183 = arith.constant 1.000000e+00 : f32
    %177 = vector.broadcast %cst_183 : f32 to vector<16x384xf32>
    %178 = arith.addf %177, %176 : vector<16x384xf32>
    %179 = arith.divf %177, %178 : vector<16x384xf32>
    %180 = arith.mulf %55, %179 : vector<16x384xf32>
    %181 = arith.addf %180, %174 : vector<16x384xf32>
    %c0_184 = arith.constant 0 : index
    %c0_185 = arith.constant 0 : index
    %c0_186 = arith.constant 0 : index
    %182 = vector.load %arg10[%c0_184, %c0_185, %c0_186] : memref<1x16x384xf32, #tpu.memory_space<vmem>>, vector<1x16x384xf32>
    %183 = vector.shape_cast %182 : vector<1x16x384xf32> to vector<16x384xf32>
    %184 = vector.shape_cast %181 : vector<16x384xf32> to vector<1x16x384xf32>
    tpu.vector_store %arg10[%c0_184, %c0_185, %c0_186], %184 {strides = array<i32>} : memref<1x16x384xf32, #tpu.memory_space<vmem>>, vector<1x16x384xf32>,
    return
  }
  func.func @transform_0(%arg0: i32) -> (i32, i32, i32) {
    %c0_i32 = arith.constant 0 : i32
    %c0_i32_0 = arith.constant 0 : i32
    %c0_i32_1 = arith.constant 0 : i32
    return %arg0, %c0_i32, %c0_i32_0 : i32, i32, i32
  }
  func.func @transform_1(%arg0: i32) -> (i32, i32, i32) {
    %c0_i32 = arith.constant 0 : i32
    %c0_i32_0 = arith.constant 0 : i32
    %c0_i32_1 = arith.constant 0 : i32
    return %arg0, %c0_i32, %c0_i32_0 : i32, i32, i32
  }
  func.func @transform_2(%arg0: i32) -> (i32, i32) {
    %c0_i32 = arith.constant 0 : i32
    %c0_i32_0 = arith.constant 0 : i32
    %c0_i32_1 = arith.constant 0 : i32
    return %c0_i32, %c0_i32_0 : i32, i32
  }
  func.func @transform_3(%arg0: i32) -> (i32, i32, i32) {
    %c0_i32 = arith.constant 0 : i32
    %c0_i32_0 = arith.constant 0 : i32
    %c0_i32_1 = arith.constant 0 : i32
    %c0_i32_2 = arith.constant 0 : i32
    return %c0_i32, %c0_i32_0, %c0_i32_1 : i32, i32, i32
  }
  func.func @transform_4(%arg0: i32) -> (i32, i32, i32) {
    %c0_i32 = arith.constant 0 : i32
    %c0_i32_0 = arith.constant 0 : i32
    %c0_i32_1 = arith.constant 0 : i32
    %c0_i32_2 = arith.constant 0 : i32
    return %c0_i32, %c0_i32_0, %c0_i32_1 : i32, i32, i32
  }
  func.func @transform_5(%arg0: i32) -> (i32, i32, i32) {
    %c0_i32 = arith.constant 0 : i32
    %c0_i32_0 = arith.constant 0 : i32
    %c0_i32_1 = arith.constant 0 : i32
    %c0_i32_2 = arith.constant 0 : i32
    return %c0_i32, %c0_i32_0, %c0_i32_1 : i32, i32, i32
  }
  func.func @transform_6(%arg0: i32) -> (i32, i32) {
    %c0_i32 = arith.constant 0 : i32
    %c0_i32_0 = arith.constant 0 : i32
    %c0_i32_1 = arith.constant 0 : i32
    return %c0_i32, %c0_i32_0 : i32, i32
  }
  func.func @transform_7(%arg0: i32) -> (i32, i32) {
    %c0_i32 = arith.constant 0 : i32
    %c0_i32_0 = arith.constant 0 : i32
    %c0_i32_1 = arith.constant 0 : i32
    return %c0_i32, %c0_i32_0 : i32, i32
  }
  func.func @transform_8(%arg0: i32) -> (i32, i32) {
    %c0_i32 = arith.constant 0 : i32
    %c0_i32_0 = arith.constant 0 : i32
    %c0_i32_1 = arith.constant 0 : i32
    return %c0_i32, %c0_i32_0 : i32, i32
  }
  func.func @transform_9(%arg0: i32) -> (i32, i32, i32) {
    %c0_i32 = arith.constant 0 : i32
    %c0_i32_0 = arith.constant 0 : i32
    %c0_i32_1 = arith.constant 0 : i32
    return %arg0, %c0_i32, %c0_i32_0 : i32, i32, i32
  }
  func.func @transform_10(%arg0: i32) -> (i32, i32, i32) {
    %c0_i32 = arith.constant 0 : i32
    %c0_i32_0 = arith.constant 0 : i32
    %c0_i32_1 = arith.constant 0 : i32
    return %arg0, %c0_i32, %c0_i32_0 : i32, i32, i32
  }
}

</mosaic_0001>

<bundles_post_ra>
// kernel: sam_forward.1
= control target key start
LH: loop header
LB: loop body
LE: loop exit
PB: predicated region body
PF: predicated region fallthrough
CT: control target
= control target key end

     0   :  { %s3056_s13 = smov 0   ;;  %s3777_s0 = inlined_call_operand.vmem [shape: bf16[2,16,640], index: 0, kind: input, shape index: {}]   ;;  %s3778_s1 = inlined_call_operand.vmem [shape: f32[2,3,384], index: 1, kind: input, shape index: {}]   ;;  %s3779_s2 = inlined_call_operand.vmem [shape: f32[1,384], index: 2, kind: input, shape index: {}]   ;;  %s3780_s3 = inlined_call_operand.vmem [shape: bf16[9,16,16], index: 3, kind: input, shape index: {}]   ;;  %s3781_s4 = inlined_call_operand.vmem [shape: bf16[9,3,16], index: 4, kind: input, shape index: {}]   ;;  %s3782_s5 = inlined_call_operand.vmem [shape: bf16[9,16,3], index: 5, kind: input, shape index: {}]   ;;  %s3783_s6 = inlined_call_operand.vmem [shape: f32[16,1], index: 6, kind: input, shape index: {}]   ;;  %s3784_s7 = inlined_call_operand.vmem [shape: f32[3,1], index: 7, kind: input, shape index: {}]   ;;  %s3785_s8 = inlined_call_operand.vmem [shape: f32[16,1], index: 8, kind: input, shape index: {}]   ;;  %s3786_s9 = inlined_call_operand.vmem [shape: f32[2,16,384], index: 9, kind: output, shape index: {0}]   ;;  %s3787_s10 = inlined_call_operand.vmem [shape: f32[2,3,384], index: 10, kind: output, shape index: {1}]  }
   0x1 LB: > { %s2652_s14 = sadd.s32 4294967295, %s2989_s13   ;;  %p2656_p0 = scmp.ge.s32.totalorder %s2989_s13, 1  ;;  %s2989_s13 = sphi %s3056_s13, %s21_s13  }
   0x2   : > { %p325_p1 = scmp.lt.s32.totalorder %s2989_s13, 3 }
   0x4   : > { %p326_p2 = pnand %p2656_p0, %p325_p1 }
   0x6   : > { %329 = sbr.rel (%p326_p2) target bundleno = 912 (0x390), region = 56 }
   0xb   : > { %p373_p3 = scmp.lt.s32.totalorder %s2652_s14, 1  ;;  %s2991_s19 = smov 18   ;;  %vm498_vm0 = vcmask 154624   ;;  %v2910_v27 = vld [vmem:[%s3780_s3] sm:$0xff]  ;;  %vm439_vm1 = vcmask 130048   ;;  %vm432_vm2 = vcmask 146432  }
   0xc   : > { %s2992_s20 = smov 19   ;;  %s2993_s21 = smov 17   ;;  %v2911_v34 = vld [vmem:[%s3780_s3 + $0x8] sm:$0xff]  ;;  %vm566_vm3 = vcmask 138240   ;;  %v2912_v50 = vld [vmem:[%s3780_s3 + $0x10] sm:$0xff]  ;;  %vm3792_vm4 = vcmask 7168  }
   0xd   : > { %s3857_s14 = smov (!%p373_p3, %s2652_s14), 1  ;;  %s2994_s22 = smov 1   ;;  %vm3791_vm5 = vcmask 1039360   ;;  %vm3790_vm6 = vcmask 908288   ;;  %vm3789_vm7 = vcmask 900096   ;;  %vm3788_vm8 = vcmask 891904  }
   0xe   : > { %s2935_s15 = smul.u32 40, %s3857_s14  ;;  %s2995_s23 = smov 127   ;;  %vm1571_vm9 = vcmask 1041408   ;;  %vm1572_vm10 = vsmask.f32 1280  ;;  %vm1574_vm11 = vcmask 1043458  }
   0xf   : > { %s2996_s24 = smov 111   ;;  %s2997_s25 = smov 110   ;;  %vm1575_vm12 = vsmask.f32 3328  ;;  %vm3434_vm13 = vmand %vm1571_vm9, %vm1572_vm10  ;;  %vm1578_vm14 = vcmask 1045508  }
  0x10   : > { %s3070_s18 = scalar_lea.vmem %s3777_s0, %s2935_s15  ;;  %s2998_s26 = smov 109   ;;  %vm1579_vm15 = vsmask.f32 5376 }
  0x11   : > { %v2677_v0 = vld [vmem:[%s3070_s18 + $0x8] sm:$0xf]  ;;  %v2909_v1 = vld [vmem:[%s3070_s18 + $0x18] sm:$0xf0]  ;;  %v2669_v2 = vld [vmem:[%s3070_s18] sm:$0xf] }
  0x12   : > { %v2678_v3 = vor.u32 %v2909_v1, %v2677_v0  ;;  %v2908_v4 = vld [vmem:[%s3070_s18 + $0x10] sm:$0xf0]  ;;  %v2907_v6 = vld [vmem:[%s3070_s18 + $0xc] sm:$0xf]  ;;  %v2679_v7 = vld [vmem:[%s3070_s18 + $0x1c] sm:$0xf0] }
  0x13   : > { %v2670_v5 = vor.u32 %v2908_v4, %v2669_v2  ;;  %v2906_v8 = vld [vmem:[%s3070_s18 + $0x4] sm:$0xf]  ;;  %v2671_v9 = vld [vmem:[%s3070_s18 + $0x14] sm:$0xf0]  ;;  %v2682_v10 = vor.u32 %v2907_v6, %v2679_v7  ;;  %v2918_v15 = vld [vmem:[%s3070_s18 + $0x8] sm:$0xf] }
  0x14   : > { %428 = vrot.lane.b32.xlu1 %v2678_v3, %s2991_s19  ;;  %v2674_v11 = vor.u32 %v2906_v8, %v2671_v9  ;;  %v2740_v12 = vld [vmem:[%s3070_s18 + $0x4] sm:$0xf]  ;;  %v2920_v13 = vld [vmem:[%s3070_s18 + $0x14] sm:$0xf0]  ;;  %v2742_v16 = vld [vmem:[%s3070_s18 + $0x18] sm:$0xf0] }
  0x15   : > { %424 = vrot.lane.b32.xlu0 %v2670_v5, %s2991_s19  ;;  %490 = vrot.lane.b32.xlu2 %v2670_v5, %s2992_s20  ;;  %v2741_v14 = vor.u32 %v2920_v13, %v2740_v12  ;;  %v2745_v17 = vor.u32 %v2918_v15, %v2742_v16  ;;  %v2919_v18 = vld [vmem:[%s3070_s18 + $0x10] sm:$0xf]  ;;  %v2750_v19 = vld [vmem:[%s3070_s18 + $0x20] sm:$0xf0]  ;;  %s2936_s29 = smul.u32 12, %s3857_s14 }
  0x16   : > { %v2748_v20 = vld [vmem:[%s3070_s18 + $0xc] sm:$0xf]  ;;  %v2921_v21 = vld [vmem:[%s3070_s18 + $0x1c] sm:$0xf0]  ;;  %v2753_v22 = vor.u32 %v2919_v18, %v2750_v19  ;;  %v2719_v45 = vld [vmem:[%s3070_s18 + $0x4] sm:$0xf] }
  0x17   : > { %v2749_v23 = vor.u32 %v2921_v21, %v2748_v20  ;;  %v2915_v46 = vld [vmem:[%s3070_s18 + $0x14] sm:$0xf0]  ;;  %v2727_v52 = vld [vmem:[%s3070_s18 + $0xc] sm:$0xf]  ;;  %v2916_v53 = vld [vmem:[%s3070_s18 + $0x1c] sm:$0xf0]  ;;  %s382_s12 = scalar_lea.vmem %s3778_s1, %s2936_s29  ;;  %s392_s28 = scalar_lea.vmem %s3787_s10, %s2936_s29 }
  0x18   : > { %v3171_v51 = vor.u32 %v2915_v46, %v2719_v45  ;;  %v2914_v54 = vld [vmem:[%s3070_s18 + $0x8] sm:$0xf]  ;;  %v2721_v55 = vld [vmem:[%s3070_s18 + $0x18] sm:$0xf0]  ;;  %v3181_v56 = vor.u32 %v2916_v53, %v2727_v52  ;;  %v2917_v13 = vld [vmem:[%s3780_s3 + $0x20] sm:$0xff]  ;;  %s2937_s30 = smul.u32 48, %s3857_s14 }
  0x19   : > { %v3184_v58 = vor.u32 %v2914_v54, %v2721_v55  ;;  %v2922_v15 = vld [vmem:[%s3780_s3 + $0x28] sm:$0xff] }
  0x1a   : > { %v2799_v52 = vld [vmem:[%s3781_s4 + $0x8] sm:$0x3] }
  0x1c   : > { %430 = vrot.lane.b32.xlu1 %v2682_v10, %s2991_s19 }
  0x1d   : > { %426 = vrot.lane.b32.xlu0 %v2674_v11, %s2991_s19  ;;  %492 = vrot.lane.b32.xlu2 %v2674_v11, %s2992_s20 }
  0x24   : > { %496 = vrot.lane.b32.xlu1 %v2682_v10, %s2992_s20 }
  0x25   : > { %494 = vrot.lane.b32.xlu0 %v2678_v3, %s2992_s20  ;;  %558 = vrot.lane.b32.xlu2 %v2670_v5, %s2993_s21 }
  0x2c   : > { %562 = vrot.lane.b32.xlu1 %v2678_v3, %s2993_s21 }
  0x2d   : > { %560 = vrot.lane.b32.xlu0 %v2674_v11, %s2993_s21  ;;  %564 = vrot.lane.b32.xlu2 %v2682_v10, %s2993_s21 }
  0x34   : > { %634 = vrot.lane.b32.xlu1 %v2674_v11, %s2994_s22 }
  0x35   : > { %632 = vrot.lane.b32.xlu0 %v2670_v5, %s2994_s22  ;;  %636 = vrot.lane.b32.xlu2 %v2678_v3, %s2994_s22  ;;  %v2913_v3 = vld [vmem:[%s3780_s3 + $0x18] sm:$0xff] }
  0x3c   : > { %805 = vrot.lane.b32.xlu1 %v2741_v14, %s2995_s23 }
  0x3d   : > { %638 = vrot.lane.b32.xlu0 %v2682_v10, %s2994_s22  ;;  %807 = vrot.lane.b32.xlu2 %v2745_v17, %s2995_s23 }
  0x44   : > { %811 = vrot.lane.b32.xlu1 %v2753_v22, %s2995_s23 }
  0x45   : > { %809 = vrot.lane.b32.xlu0 %v2749_v23, %s2995_s23  ;;  %879 = vrot.lane.b32.xlu2 %v2741_v14, %s2996_s24 }
  0x4c   : > { %883 = vrot.lane.b32.xlu1 %v2749_v23, %s2996_s24 }
  0x4d   : > { %881 = vrot.lane.b32.xlu0 %v2745_v17, %s2996_s24  ;;  %885 = vrot.lane.b32.xlu2 %v2753_v22, %s2996_s24 }
  0x54   : > { %955 = vrot.lane.b32.xlu1 %v2745_v17, %s2997_s25 }
  0x55   : > { %953 = vrot.lane.b32.xlu0 %v2741_v14, %s2997_s25  ;;  %957 = vrot.lane.b32.xlu2 %v2749_v23, %s2997_s25 }
  0x5c   : > { %1027 = vrot.lane.b32.xlu1 %v2741_v14, %s2998_s26 }
  0x5d   : > { %959 = vrot.lane.b32.xlu0 %v2753_v22, %s2997_s25  ;;  %1029 = vrot.lane.b32.xlu2 %v2745_v17, %s2998_s26 }
  0x64   : > { %1033 = vrot.lane.b32.xlu1 %v2753_v22, %s2998_s26 }
  0x65   : > { %1031 = vrot.lane.b32.xlu0 %v2749_v23, %s2998_s26 }
  0x6f   : > { %v491_v24 = vpop.permute.xlu2 %490 }
  0x77   : > { %v493_v25 = vpop.permute.xlu2 %492 }
  0x78   : > { %v3121_v26 = vsel %vm498_vm0, %v491_v24, %v493_v25 }
  0x79   : > { %515 = vmatpush.bf16.msra.mxu3 %v3121_v26 }
  0x7c   : > { %2690 = vmatmul.msk.bf16.vlgmr.msra.gmra.mxu3 %vm439_vm1, %v2910_v27 }
  0x7f   : > { %v559_v30 = vpop.permute.xlu2 %558 }
  0x86   : > { %v429_v28 = vpop.permute.xlu1 %428 }
  0x87   : > { %v425_v29 = vpop.permute.xlu0 %424  ;;  %v565_v38 = vpop.permute.xlu2 %564 }
  0x8e   : > { %v431_v31 = vpop.permute.xlu1 %430 }
  0x8f   : > { %v427_v32 = vpop.permute.xlu0 %426  ;;  %v3129_v33 = vsel %vm432_vm2, %v429_v28, %v431_v31  ;;  %v637_v49 = vpop.permute.xlu2 %636 }
  0x90   : > { %v3135_v35 = vsel %vm432_vm2, %v425_v29, %v427_v32  ;;  %v3138_v36 = vsel %vm432_vm2, %v427_v32, %v429_v28  ;;  %478 = vmatpush.bf16.msra.mxu2 %v3129_v33 }
  0x91   : > { %450 = vmatpush.bf16.msra.mxu0 %v3135_v35  ;;  %464 = vmatpush.bf16.msra.mxu1 %v3138_v36 }
  0x93   : > { %2685 = vmatmul.msk.bf16.vlgmr.msra.gmra.mxu2 %vm439_vm1, %v2911_v34 }
  0x94   : > { %2683 = vmatmul.msk.bf16.vlgmr.msra.gmra.mxu0 %vm439_vm1, %v2911_v34  ;;  %2684 = vmatmul.msk.bf16.vlgmr.msra.gmra.mxu1 %vm439_vm1, %v2911_v34  ;;  %v2924_v34 = vld [vmem:[%s3780_s3 + $0x38] sm:$0xff] }
  0x96   : > { %v497_v37 = vpop.permute.xlu1 %496 }
  0x97   : > { %v495_v39 = vpop.permute.xlu0 %494  ;;  %v808_v62 = vpop.permute.xlu2 %807 }
  0x98   : > { %v3147_v40 = vsel %vm498_vm0, %v493_v25, %v495_v39  ;;  %v3150_v41 = vsel %vm498_vm0, %v495_v39, %v497_v37  ;;  %v2784_v37 = vld [vmem:[%s3781_s4 + $0x2] sm:$0x3]  ;;  %v2791_v39 = vld [vmem:[%s3781_s4 + $0x4] sm:$0x3] }
  0x99   : > { %529 = vmatpush.bf16.msrb.mxu0 %v3147_v40  ;;  %543 = vmatpush.bf16.msrb.mxu1 %v3150_v41 }
  0x9e   : > { %v563_v42 = vpop.permute.xlu1 %562 }
  0x9f   : > { %v561_v43 = vpop.permute.xlu0 %560  ;;  %v3155_v44 = vsel %vm566_vm3, %v563_v42, %v565_v38  ;;  %v880_v4 = vpop.permute.xlu2 %879 }
  0xa0   : > { %v3160_v47 = vsel %vm566_vm3, %v559_v30, %v561_v43  ;;  %v3163_v48 = vsel %vm566_vm3, %v561_v43, %v563_v42  ;;  %611 = vmatpush.bf16.msra.mxu0 %v3155_v44 }
  0xa1   : > { %583 = vmatpush.bf16.msrb.mxu2 %v3160_v47  ;;  %597 = vmatpush.bf16.msrb.mxu3 %v3163_v48 }
  0xa4   : > { %2691 = vmatmul.msk.bf16.vlgmr.msrb.gmra.mxu0 %vm439_vm1, %v2910_v27  ;;  %2692 = vmatmul.msk.bf16.vlgmr.msrb.gmra.mxu1 %vm439_vm1, %v2910_v27  ;;  %v2923_v27 = vld [vmem:[%s3780_s3 + $0x30] sm:$0xff] }
  0xa5   : > { %2699 = vmatmul.msk.bf16.vlgmr.msrb.gmra.mxu2 %vm439_vm1, %v2912_v50  ;;  %2700 = vmatmul.msk.bf16.vlgmr.msrb.gmra.mxu3 %vm439_vm1, %v2912_v50 }
  0xa6   : > { %v635_v57 = vpop.permute.xlu1 %634  ;;  %736 = vmatpush.bf16.msrb.mxu0 %v3171_v51 }
  0xa7   : > { %v633_v59 = vpop.permute.xlu0 %632  ;;  %v3187_v60 = vsel %vm3792_vm4, %v635_v57, %v637_v49  ;;  %v886_v9 = vpop.permute.xlu2 %885 }
  0xa8   : > { %v3190_v61 = vsel %vm3792_vm4, %v633_v59, %v635_v57  ;;  %671 = vmatpush.bf16.msra.mxu2 %v3187_v60 }
  0xa9   : > { %657 = vmatpush.bf16.msra.mxu1 %v3190_v61 }
  0xac   : > { %764 = vmatpush.bf16.msrb.mxu2 %v3181_v56 }
  0xad   : > { %750 = vmatpush.bf16.msrb.mxu1 %v3184_v58 }
  0xae   : > { %v806_v63 = vpop.permute.xlu1 %805 }
  0xaf   : > { %v639_v0 = vpop.permute.xlu0 %638  ;;  %v3197_v1 = vsel %vm3791_vm5, %v806_v63, %v808_v62  ;;  %v958_v18 = vpop.permute.xlu2 %957 }
  0xb0   : > { %v3200_v2 = vsel %vm3792_vm4, %v637_v49, %v639_v0  ;;  %v2795_v49 = vld [vmem:[%s3781_s4 + $0x6] sm:$0x3] }
  0xb1   : > { %685 = vmatpush.bf16.msra.mxu3 %v3200_v2 }
  0xb4   : > { %2701 = vmatmul.msk.bf16.vlgmr.msra.gmra.mxu0 %vm439_vm1, %v2912_v50  ;;  %2708 = vmatmul.msk.bf16.vlgmr.msra.gmra.mxu1 %vm439_vm1, %v2913_v3 }
  0xb5   : > { %830 = vmatpush.bf16.msrb.mxu3 %v3197_v1  ;;  %2709 = vmatmul.msk.bf16.vlgmr.msra.gmra.mxu2 %vm439_vm1, %v2913_v3 }
  0xb6   : > { %2710 = vmatmul.msk.bf16.vlgmr.msra.gmra.mxu3 %vm439_vm1, %v2913_v3  ;;  %v812_v5 = vpop.permute.xlu1 %811  ;;  %v2803_v3 = vld [vmem:[%s3781_s4 + $0xa] sm:$0x3] }
  0xb7   : > { %v810_v6 = vpop.permute.xlu0 %809  ;;  %v1030_v25 = vpop.permute.xlu2 %1029 }
  0xb8   : > { %v3212_v7 = vsel %vm3791_vm5, %v808_v62, %v810_v6  ;;  %v3215_v8 = vsel %vm3791_vm5, %v810_v6, %v812_v5  ;;  %vm1580_vm5 = vmand %vm1578_vm14, %vm1579_vm15  ;;  %vm3824_vm15 = vcmask 900096  }
  0xb9   : > { %844 = vmatpush.bf16.msra.mxu0 %v3212_v7  ;;  %858 = vmatpush.bf16.msra.mxu1 %v3215_v8 }
  0xbe   : > { %v884_v10 = vpop.permute.xlu1 %883 }
  0xbf   : > { %v882_v11 = vpop.permute.xlu0 %881  ;;  %v3234_v16 = vsel %vm3790_vm6, %v884_v10, %v886_v9 }
  0xc0   : > { %v3220_v12 = vsel %vm3790_vm6, %v880_v4, %v882_v11  ;;  %v3226_v14 = vsel %vm3790_vm6, %v882_v11, %v884_v10  ;;  %vm1583_vm6 = vsmask.f32 7424 }
  0xc1   : > { %918 = vmatpush.bf16.msra.mxu3 %v3226_v14  ;;  %904 = vmatpush.bf16.msra.mxu2 %v3220_v12 }
  0xc4   : > { %2729 = vmatmul.msk.bf16.vlgmr.msrb.gmra.mxu0 %vm439_vm1, %v2917_v13  ;;  %2730 = vmatmul.msk.bf16.vlgmr.msrb.gmra.mxu1 %vm439_vm1, %v2917_v13 }
  0xc5   : > { %2731 = vmatmul.msk.bf16.vlgmr.msrb.gmra.mxu2 %vm439_vm1, %v2917_v13  ;;  %932 = vmatpush.bf16.msrb.mxu0 %v3234_v16 }
  0xc6   : > { %2754 = vmatmul.msk.bf16.vlgmr.msrb.gmra.mxu3 %vm439_vm1, %v2922_v15  ;;  %v956_v17 = vpop.permute.xlu1 %955 }
  0xc7   : > { %v954_v19 = vpop.permute.xlu0 %953  ;;  %v3242_v20 = vsel %vm3789_vm7, %v956_v17, %v958_v18 }
  0xc8   : > { %v3245_v21 = vsel %vm3789_vm7, %v954_v19, %v956_v17  ;;  %992 = vmatpush.bf16.msrb.mxu2 %v3242_v20 }
  0xc9   : > { %978 = vmatpush.bf16.msrb.mxu1 %v3245_v21 }
  0xce   : > { %v1028_v22 = vpop.permute.xlu1 %1027 }
  0xcf   : > { %v960_v23 = vpop.permute.xlu0 %959  ;;  %v3257_v28 = vsel %vm3788_vm8, %v1028_v22, %v1030_v25 }
  0xd0   : > { %v3250_v24 = vsel %vm3789_vm7, %v958_v18, %v960_v23  ;;  %vm1582_vm7 = vcmask 1047558  }
  0xd1   : > { %1006 = vmatpush.bf16.msrb.mxu3 %v3250_v24  ;;  %vm1584_vm10 = vmand %vm1582_vm7, %vm1583_vm6  ;;  %vm1644_vm6 = vcmask 23552   ;;  %vm3818_vm7 = vcmask 1039360  }
  0xd4   : > { %2755 = vmatmul.msk.bf16.vlgmr.msra.gmra.mxu0 %vm439_vm1, %v2922_v15  ;;  %2756 = vmatmul.msk.bf16.vlgmr.msra.gmra.mxu1 %vm439_vm1, %v2922_v15 }
  0xd5   : > { %2763 = vmatmul.msk.bf16.vlgmr.msra.gmra.mxu2 %vm439_vm1, %v2923_v27  ;;  %1052 = vmatpush.bf16.msra.mxu0 %v3257_v28 }
  0xd6   : > { %2764 = vmatmul.msk.bf16.vlgmr.msra.gmra.mxu3 %vm439_vm1, %v2923_v27  ;;  %v1034_v29 = vpop.permute.xlu1 %1033 }
  0xd7   : > { %1124 = vmatpush.bf16.msra.mxu3 %v3135_v35  ;;  %v1032_v30 = vpop.permute.xlu0 %1031  ;;  %v2925_v35 = vld [vmem:[%s3780_s3 + $0x40] sm:$0xff] }
  0xd8   : > { %v3266_v31 = vsel %vm3788_vm8, %v1030_v25, %v1032_v30  ;;  %v3269_v32 = vsel %vm3788_vm8, %v1032_v30, %v1034_v29 }
  0xd9   : > { %1066 = vmatpush.bf16.msra.mxu1 %v3266_v31  ;;  %1080 = vmatpush.bf16.msra.mxu2 %v3269_v32 }
  0xe4   : > { %2765 = vmatmul.msk.bf16.vlgmr.msrb.gmra.mxu0 %vm439_vm1, %v2923_v27  ;;  %2772 = vmatmul.msk.bf16.vlgmr.msrb.gmra.mxu1 %vm439_vm1, %v2924_v34 }
  0xe5   : > { %2773 = vmatmul.msk.bf16.vlgmr.msrb.gmra.mxu2 %vm439_vm1, %v2924_v34  ;;  %1137 = vmatpush.bf16.msrb.mxu0 %v3138_v36 }
  0xe6   : > { %2774 = vmatmul.msk.bf16.vlgmr.msrb.gmra.mxu3 %vm439_vm1, %v2924_v34  ;;  %1150 = vmatpush.bf16.msrb.mxu1 %v3129_v33 }
  0xe7   : > { %1166 = vmatpush.bf16.msrb.mxu2 %v3121_v26  ;;  %1179 = vmatpush.bf16.msrb.mxu3 %v3147_v40  ;;  %v1111_v26 = vld [vmem:[%s3781_s4] sm:$0x3] }
  0xf4   : > { %2781 = vmatmul.msk.bf16.vlgmr.msra.gmra.mxu0 %vm439_vm1, %v2925_v35  ;;  %2782 = vmatmul.msk.bf16.vlgmr.msra.gmra.mxu1 %vm439_vm1, %v2925_v35 }
  0xf5   : > { %2783 = vmatmul.msk.bf16.vlgmr.msra.gmra.mxu2 %vm439_vm1, %v2925_v35  ;;  %1192 = vmatpush.bf16.msra.mxu0 %v3150_v41 }
  0xf6   : > { %2785 = vmatmul.msk.bf16.vlgmr.msra.gmra.mxu3 %vm439_vm1, %v2784_v37  ;;  %1210 = vmatpush.bf16.msra.mxu1 %v3160_v47 }
  0xf7   : > { %1223 = vmatpush.bf16.msra.mxu2 %v3163_v48  ;;  %1236 = vmatpush.bf16.msra.mxu3 %v3155_v44 }
  0xff   : > { %v517_v33 = vpop.f32.mrf.mxu3 }
 0x104   : > { %2786 = vmatmul.msk.bf16.vlgmr.msrb.gmra.mxu0 %vm439_vm1, %v2784_v37  ;;  %2787 = vmatmul.msk.bf16.vlgmr.msrb.gmra.mxu1 %vm439_vm1, %v2784_v37 }
 0x105   : > { %2788 = vmatmul.msk.bf16.vlgmr.msrb.gmra.mxu2 %vm439_vm1, %v1111_v26  ;;  %1257 = vmatpush.bf16.msrb.mxu0 %v3190_v61 }
 0x106   : > { %2789 = vmatmul.msk.bf16.vlgmr.msrb.gmra.mxu3 %vm439_vm1, %v1111_v26  ;;  %1270 = vmatpush.bf16.msrb.mxu1 %v3187_v60 }
 0x107   : > { %1283 = vmatpush.bf16.msrb.mxu2 %v3200_v2  ;;  %1304 = vmatpush.bf16.msrb.mxu3 %v3171_v51  ;;  %v519_v42 = vpop.f32.mrf.mxu3 }
 0x111   : > { %v452_v36 = vpop.f32.mrf.mxu0  ;;  %v466_v38 = vpop.f32.mrf.mxu1 }
 0x112   : > { %v518_v40 = vadd.f32 %v517_v33, %v452_v36  ;;  %v1527_v36 = vld [vmem:[%s3784_s7] sm:$0x7] }
 0x114   : > { %2790 = vmatmul.msk.bf16.vlgmr.msra.gmra.mxu0 %vm439_vm1, %v1111_v26  ;;  %2792 = vmatmul.msk.bf16.vlgmr.msra.gmra.mxu1 %vm439_vm1, %v2791_v39 }
 0x115   : > { %2793 = vmatmul.msk.bf16.vlgmr.msra.gmra.mxu2 %vm439_vm1, %v2791_v39  ;;  %1317 = vmatpush.bf16.msra.mxu0 %v3184_v58 }
 0x116   : > { %2794 = vmatmul.msk.bf16.vlgmr.msra.gmra.mxu3 %vm439_vm1, %v2791_v39  ;;  %1351 = vmatpush.bf16.msra.mxu2 %v3197_v1  ;;  %v480_v41 = vpop.f32.mrf.mxu2 }
 0x117   : > { %1364 = vmatpush.bf16.msra.mxu3 %v3212_v7  ;;  %1330 = vmatpush.bf16.msra.mxu1 %v3181_v56 }
 0x119   : > { %v454_v43 = vpop.f32.mrf.mxu0  ;;  %v468_v44 = vpop.f32.mrf.mxu1 }
 0x11a   : > { %v3320_v45 = vadd.f32 %v519_v42, %v454_v43 }
 0x11e   : > { %v482_v46 = vpop.f32.mrf.mxu2 }
 0x121   : > { %v531_v47 = vpop.f32.mrf.mxu0  ;;  %v545_v48 = vpop.f32.mrf.mxu1 }
 0x122   : > { %v532_v50 = vadd.f32 %v531_v47, %v466_v38  ;;  %v546_v51 = vadd.f32 %v545_v48, %v480_v41  ;;  %v2999_v38 = vmov 0  }
 0x123   : > { %2956 = vset.pattern.permute.xlu2 %v2999_v38  ;;  %2958 = vset.pattern.permute.xlu1 %v2999_v38 }
 0x124   : > { %2796 = vmatmul.msk.bf16.vlgmr.msrb.gmra.mxu0 %vm439_vm1, %v2795_v49  ;;  %2797 = vmatmul.msk.bf16.vlgmr.msrb.gmra.mxu1 %vm439_vm1, %v2795_v49 }
 0x125   : > { %2798 = vmatmul.msk.bf16.vlgmr.msrb.gmra.mxu2 %vm439_vm1, %v2795_v49  ;;  %1377 = vmatpush.bf16.msrb.mxu0 %v3215_v8 }
 0x126   : > { %2800 = vmatmul.msk.bf16.vlgmr.msrb.gmra.mxu3 %vm439_vm1, %v2799_v52  ;;  %1398 = vmatpush.bf16.msrb.mxu1 %v3220_v12 }
 0x127   : > { %1411 = vmatpush.bf16.msrb.mxu2 %v3226_v14  ;;  %1424 = vmatpush.bf16.msrb.mxu3 %v3234_v16  ;;  %v2807_v14 = vld [vmem:[%s3781_s4 + $0xc] sm:$0x3] }
 0x128   : > { %v585_v53 = vpop.f32.mrf.mxu2  ;;  %v599_v54 = vpop.f32.mrf.mxu3  ;;  %1530 = vperm.xlu2 %2956, %v1527_v36   ;;  %2957 = vset.pattern.permute.xlu0 %v2999_v38 }
 0x129   : > { %v618_v55 = vadd.f32 %v585_v53, %v518_v40  ;;  %v619_v56 = vadd.f32 %v599_v54, %v532_v50  ;;  %v533_v57 = vpop.f32.mrf.mxu0  ;;  %v547_v58 = vpop.f32.mrf.mxu1 }
 0x12a   : > { %v3336_v59 = vadd.f32 %v533_v57, %v468_v44  ;;  %v3338_v60 = vadd.f32 %v547_v58, %v482_v46 }
 0x130   : > { %v3340_v61 = vpop.f32.mrf.mxu2  ;;  %v3342_v62 = vpop.f32.mrf.mxu3 }
 0x131   : > { %v613_v63 = vpop.f32.mrf.mxu0  ;;  %v659_v0 = vpop.f32.mrf.mxu1 }
 0x132   : > { %v620_v1 = vadd.f32 %v613_v63, %v546_v51  ;;  %v692_v2 = vadd.f32 %v659_v0, %v618_v55 }
 0x134   : > { %2801 = vmatmul.msk.bf16.vlgmr.msra.gmra.mxu0 %vm439_vm1, %v2799_v52  ;;  %2802 = vmatmul.msk.bf16.vlgmr.msra.gmra.mxu1 %vm439_vm1, %v2799_v52 }
 0x135   : > { %2804 = vmatmul.msk.bf16.vlgmr.msra.gmra.mxu2 %vm439_vm1, %v2803_v3  ;;  %1445 = vmatpush.bf16.msra.mxu0 %v3245_v21 }
 0x136   : > { %2805 = vmatmul.msk.bf16.vlgmr.msra.gmra.mxu3 %vm439_vm1, %v2803_v3  ;;  %1458 = vmatpush.bf16.msra.mxu1 %v3242_v20 }
 0x137   : > { %1471 = vmatpush.bf16.msra.mxu2 %v3250_v24  ;;  %1492 = vmatpush.bf16.msra.mxu3 %v3257_v28  ;;  %v2811_v28 = vld [vmem:[%s3781_s4 + $0xe] sm:$0x3] }
 0x138   : > { %v673_v4 = vpop.f32.mrf.mxu2 }
 0x139   : > { %v687_v5 = vpop.f32.mrf.mxu3  ;;  %v693_v6 = vadd.f32 %v673_v4, %v619_v56  ;;  %v3355_v8 = vpop.f32.mrf.mxu0 }
 0x13a   : > { %v694_v7 = vadd.f32 %v687_v5, %v620_v1  ;;  %v3357_v9 = vpop.f32.mrf.mxu1 }
 0x140   : > { %v3359_v10 = vpop.f32.mrf.mxu2 }
 0x141   : > { %v3361_v11 = vpop.f32.mrf.mxu3  ;;  %v738_v12 = vpop.f32.mrf.mxu0 }
 0x142   : > { %v752_v13 = vpop.f32.mrf.mxu1  ;;  %v771_v15 = vadd.f32 %v738_v12, %v692_v2 }
 0x143   : > { %v772_v16 = vadd.f32 %v752_v13, %v693_v6 }
 0x144   : > { %2806 = vmatmul.msk.bf16.vlgmr.msrb.gmra.mxu0 %vm439_vm1, %v2803_v3  ;;  %2808 = vmatmul.msk.bf16.vlgmr.msrb.gmra.mxu1 %vm439_vm1, %v2807_v14 }
 0x145   : > { %2809 = vmatmul.msk.bf16.vlgmr.msrb.gmra.mxu2 %vm439_vm1, %v2807_v14  ;;  %1505 = vmatpush.bf16.msrb.mxu0 %v3266_v31  ;;  %v2815_v31 = vld [vmem:[%s3781_s4 + $0x10] sm:$0x3] }
 0x146   : > { %2810 = vmatmul.msk.bf16.vlgmr.msrb.gmra.mxu3 %vm439_vm1, %v2807_v14  ;;  %1518 = vmatpush.bf16.msrb.mxu1 %v3269_v32 }
 0x148   : > { %v766_v17 = vpop.f32.mrf.mxu2 }
 0x149   : > { %v832_v18 = vpop.f32.mrf.mxu3  ;;  %v773_v19 = vadd.f32 %v766_v17, %v694_v7  ;;  %v3372_v21 = vpop.f32.mrf.mxu0 }
 0x14a   : > { %v865_v20 = vadd.f32 %v832_v18, %v771_v15  ;;  %3793 = vst [vmem:[#allocation3_spill] sm:$0xff] %v3372_v21  ;;  %v3374_v22 = vpop.f32.mrf.mxu1 }
 0x14b   : > { %3794 = vst [vmem:[#allocation4_spill] sm:$0xff] %v3374_v22 }
 0x150   : > { %v3376_v23 = vpop.f32.mrf.mxu2 }
 0x151   : > { %3795 = vst [vmem:[#allocation5_spill] sm:$0xff] %v3376_v23  ;;  %v3378_v24 = vpop.f32.mrf.mxu3  ;;  %v846_v25 = vpop.f32.mrf.mxu0 }
 0x152   : > { %3796 = vst [vmem:[#allocation6_spill] sm:$0xff] %v3378_v24  ;;  %v860_v27 = vpop.f32.mrf.mxu1  ;;  %v866_v29 = vadd.f32 %v846_v25, %v772_v16 }
 0x153   : > { %v867_v30 = vadd.f32 %v860_v27, %v773_v19 }
 0x154   : > { %2812 = vmatmul.msk.bf16.vlgmr.msra.gmra.mxu0 %vm439_vm1, %v2811_v28  ;;  %2813 = vmatmul.msk.bf16.vlgmr.msra.gmra.mxu1 %vm439_vm1, %v2811_v28 }
 0x155   : > { %2814 = vmatmul.msk.bf16.vlgmr.msra.gmra.mxu2 %vm439_vm1, %v2811_v28 }
 0x156   : > { %2816 = vmatmul.msk.bf16.vlgmr.msra.gmra.mxu3 %vm439_vm1, %v2815_v31 }
 0x158   : > { %v906_v32 = vpop.f32.mrf.mxu2 }
 0x159   : > { %v920_v34 = vpop.f32.mrf.mxu3  ;;  %v939_v35 = vadd.f32 %v906_v32, %v865_v20  ;;  %v3390_v26 = vpop.f32.mrf.mxu0 }
 0x15a   : > { %v940_v37 = vadd.f32 %v920_v34, %v866_v29  ;;  %3797 = vst [vmem:[#allocation7_spill] sm:$0xff] %v3390_v26  ;;  %v3392_v33 = vpop.f32.mrf.mxu1 }
 0x15b   : > { %3798 = vst [vmem:[#allocation8_spill] sm:$0xff] %v3392_v33 }
 0x160   : > { %v3397_v39 = vpop.f32.mrf.mxu2 }
 0x161   : > { %3799 = vst [vmem:[#allocation9_spill] sm:$0xff] %v3397_v39  ;;  %v3399_v40 = vpop.f32.mrf.mxu3  ;;  %v934_v41 = vpop.f32.mrf.mxu0 }
 0x162   : > { %3800 = vst [vmem:[#allocation10_spill] sm:$0xff] %v3399_v40  ;;  %v980_v42 = vpop.f32.mrf.mxu1  ;;  %v941_v43 = vadd.f32 %v934_v41, %v867_v30 }
 0x163   : > { %v1013_v44 = vadd.f32 %v980_v42, %v939_v35 }
 0x164   : > { %2817 = vmatmul.msk.bf16.vlgmr.msrb.gmra.mxu0 %vm439_vm1, %v2815_v31  ;;  %2818 = vmatmul.msk.bf16.vlgmr.msrb.gmra.mxu1 %vm439_vm1, %v2815_v31  ;;  %vm1576_vm1 = vmand %vm1574_vm11, %vm1575_vm12  ;;  %vm3821_vm12 = vcmask 908288  }
 0x165   : > { %vm1577_vm8 = vmor %vm1576_vm1, %vm3434_vm13 }
 0x166   : > { %vm3441_vm4 = vmor %vm1580_vm5, %vm1577_vm8  ;;  %vm1566_vm5 = vcmask 1043456  }
 0x167   : > { %vm1585_vm11 = vmor %vm1584_vm10, %vm3441_vm4  ;;  %vm3826_vm10 = vcmask 891904  }
 0x168   : > { %v994_v46 = vpop.f32.mrf.mxu2  ;;  %vm3819_vm8 = vmmov %vm3818_vm7 }
 0x169   : > { %v1008_v47 = vpop.f32.mrf.mxu3  ;;  %v1014_v48 = vadd.f32 %v994_v46, %v940_v37  ;;  %v3403_v50 = vpop.f32.mrf.mxu0  ;;  %vm3825_vm1 = vmmov %vm3824_vm15 }
 0x16a   : > { %v1015_v49 = vadd.f32 %v1008_v47, %v941_v43  ;;  %3801 = vst [vmem:[#allocation11_spill] sm:$0xff] %v3403_v50  ;;  %v3405_v51 = vpop.f32.mrf.mxu1 }
 0x16b   : > { %3802 = vst [vmem:[#allocation12_spill] sm:$0xff] %v3405_v51 }
 0x170   : > { %v3407_v52 = vpop.f32.mrf.mxu2 }
 0x171   : > { %3803 = vst [vmem:[#allocation13_spill] sm:$0xff] %v3407_v52  ;;  %v3409_v53 = vpop.f32.mrf.mxu3  ;;  %v1054_v54 = vpop.f32.mrf.mxu0 }
 0x172   : > { %3804 = vst [vmem:[#allocation14_spill] sm:$0xff] %v3409_v53  ;;  %v1068_v55 = vpop.f32.mrf.mxu1  ;;  %v3411_v56 = vadd.f32 %v1054_v54, %v1013_v44 }
 0x173   : > { %v3413_v57 = vadd.f32 %v1068_v55, %v1014_v48  ;;  %v1536_v48 = vld [vmem:[%s382_s12] sm:$0x77] }
 0x174   : > { %3805 = vst [vmem:[#allocation15_spill] sm:$0xff] %v3411_v56 }
 0x175   : > { %3806 = vst [vmem:[#allocation16_spill] sm:$0xff] %v3413_v57 }
 0x176   : > { %1540 = vst [vmem:[#allocation1] ss:$2 sm:$0xff] %v1536_v48 }
 0x178   : > { %v1082_v58 = vpop.f32.mrf.mxu2 }
 0x179   : > { %v1126_v63 = vpop.f32.mrf.mxu3  ;;  %v3415_v0 = vadd.f32 %v1082_v58, %v1015_v49  ;;  %v3417_v1 = vpop.f32.mrf.mxu0 }
 0x17a   : > { %3808 = vst [vmem:[#allocation18_spill] sm:$0xff] %v3417_v1  ;;  %v3419_v2 = vpop.f32.mrf.mxu1 }
 0x17b   : > { %3807 = vst [vmem:[#allocation17_spill] sm:$0xff] %v3415_v0 }
 0x17c   : > { %3809 = vst [vmem:[#allocation19_spill] sm:$0xff] %v3419_v2 }
 0x180   : > { %v3421_v3 = vpop.f32.mrf.mxu2 }
 0x181   : > { %3810 = vst [vmem:[#allocation20_spill] sm:$0xff] %v3421_v3  ;;  %v1128_v4 = vpop.f32.mrf.mxu3  ;;  %v1139_v5 = vpop.f32.mrf.mxu0 }
 0x182   : > { %v1152_v6 = vpop.f32.mrf.mxu1 }
 0x188   : > { %v1168_v7 = vpop.f32.mrf.mxu2 }
 0x189   : > { %v1181_v12 = vpop.f32.mrf.mxu3  ;;  %v1169_v13 = vadd.f32 %v1168_v7, %v1126_v63  ;;  %v1141_v15 = vpop.f32.mrf.mxu0 }
 0x18a   : > { %v3423_v14 = vadd.f32 %v1181_v12, %v1139_v5  ;;  %v1154_v16 = vpop.f32.mrf.mxu1  ;;  %v1537_v5 = vld [vmem:[%s382_s12 + $0x8] sm:$0x7]  ;;  %s3732_s12 = scalar_lea.vmem %s3786_s9, %s2937_s30 }
 0x18b   : > { %1542 = vst [vmem:[#allocation1 + $0x10] ss:$2 sm:$0xff] %v1537_v5 }
 0x190   : > { %v1170_v17 = vpop.f32.mrf.mxu2 }
 0x191   : > { %v1183_v18 = vpop.f32.mrf.mxu3  ;;  %v1194_v19 = vpop.f32.mrf.mxu0 }
 0x192   : > { %v1212_v20 = vpop.f32.mrf.mxu1  ;;  %v3425_v25 = vadd.f32 %v1194_v19, %v1152_v6  ;;  %v1589_v18 = vld [vmem:[#allocation2 + $0x8] sm:$0x3] }
 0x193   : > { %v1242_v27 = vadd.f32 %v1212_v20, %v1169_v13  ;;  %v1586_v20 = vld [vmem:[#allocation2] sm:$0xff] }
 0x198   : > { %v1225_v28 = vpop.f32.mrf.mxu2 }
 0x199   : > { %v1238_v29 = vpop.f32.mrf.mxu3  ;;  %v1196_v30 = vpop.f32.mrf.mxu0  ;;  %v1243_v48 = vadd.f32 %v1225_v28, %v3423_v14 }
 0x19a   : > { %v1214_v31 = vpop.f32.mrf.mxu1  ;;  %v1590_v30 = vsel %vm3434_vm13, 0, %v1589_v18  ;;  %vm3822_vm13 = vmmov %vm3821_vm12 }
 0x19b   : > { %1591 = vst [vmem:[#allocation2 + $0x8] sm:$0x3] %v1590_v30  ;;  %v1587_v31 = vsel %vm1585_vm11, 0, %v1586_v20  ;;  %vm3827_vm11 = vmmov %vm3826_vm10 }
 0x19c   : > { %1588 = vst [vmem:[#allocation2] sm:$0xff] %v1587_v31 }
 0x1a0   : > { %v1227_v32 = vpop.f32.mrf.mxu2 }
 0x1a1   : > { %v1240_v34 = vpop.f32.mrf.mxu3  ;;  %v1259_v35 = vpop.f32.mrf.mxu0 }
 0x1a2   : > { %v1272_v37 = vpop.f32.mrf.mxu1 }
 0x1a8   : > { %v1285_v36 = vpop.f32.mrf.mxu2 }
 0x1a9   : > { %v1306_v38 = vpop.f32.mrf.mxu3  ;;  %v1261_v41 = vpop.f32.mrf.mxu0 }
 0x1aa   : > { %v1274_v42 = vpop.f32.mrf.mxu1 }
 0x1b0   : > { %v1287_v43 = vpop.f32.mrf.mxu2 }
 0x1b1   : > { %v1308_v44 = vpop.f32.mrf.mxu3  ;;  %v1319_v46 = vpop.f32.mrf.mxu0  ;;  %v1289_v43 = vadd.f32 %v1259_v35, %v1242_v27 }
 0x1b2   : > { %v1332_v47 = vpop.f32.mrf.mxu1  ;;  %v1531_v27 = vpop.permute.xlu2 %1530 }
 0x1b3   : > { %v1336_v44 = vadd.f32 %v1306_v38, %v1289_v43 }
 0x1b8   : > { %v1353_v49 = vpop.f32.mrf.mxu2 }
 0x1b9   : > { %v1366_v54 = vpop.f32.mrf.mxu3  ;;  %v1321_v55 = vpop.f32.mrf.mxu0 }
 0x1ba   : > { %v1334_v58 = vpop.f32.mrf.mxu1  ;;  %v1244_v55 = vadd.f32 %v1238_v29, %v3425_v25  ;;  %v1552_v25 = vld [vmem:[%s3779_s2] sm:$0x7] }
 0x1bb   : > { %v1383_v58 = vadd.f32 %v1353_v49, %v1336_v44  ;;  %v1543_v49 = vld.sshfl [vmem:[#allocation1] sm:$0xff pattern:$0x75316420]  ;;  %v1555_v43 = vperm.slane %v1552_v25, 1 }
 0x1c0   : > { %v1355_v63 = vpop.f32.mrf.mxu2 }
 0x1c1   : > { %v1368_v4 = vpop.f32.mrf.mxu3  ;;  %v1379_v6 = vpop.f32.mrf.mxu0  ;;  %v1290_v63 = vadd.f32 %v1272_v37, %v1243_v48  ;;  %v1556_v48 = vperm.slane %v1552_v25, 2 }
 0x1c2   : > { %v1400_v7 = vpop.f32.mrf.mxu1  ;;  %v1291_v4 = vadd.f32 %v1285_v36, %v1244_v55 }
 0x1c3   : > { %v1430_v5 = vadd.f32 %v1400_v7, %v1383_v58  ;;  %v1337_v20 = vadd.f32 %v1319_v46, %v1290_v63 }
 0x1c4   : > { %v1338_v30 = vadd.f32 %v1332_v47, %v1291_v4 }
 0x1c8   : > { %v1413_v13 = vpop.f32.mrf.mxu2 }
 0x1c9   : > { %v1426_v15 = vpop.f32.mrf.mxu3  ;;  %v1381_v16 = vpop.f32.mrf.mxu0 }
 0x1ca   : > { %v1402_v17 = vpop.f32.mrf.mxu1 }
 0x1d0   : > { %v1415_v32 = vpop.f32.mrf.mxu2 }
 0x1d1   : > { %v1428_v34 = vpop.f32.mrf.mxu3  ;;  %v1447_v41 = vpop.f32.mrf.mxu0  ;;  %v1384_v32 = vadd.f32 %v1366_v54, %v1337_v20  ;;  %v1544_v54 = vld.sshfl [vmem:[#allocation1 + $0x8] sm:$0xff pattern:$0x75316420] }
 0x1d2   : > { %v1460_v42 = vpop.f32.mrf.mxu1  ;;  %v1477_v31 = vadd.f32 %v1447_v41, %v1430_v5  ;;  %v1385_v34 = vadd.f32 %v1379_v6, %v1338_v30  ;;  %v1554_v41 = vperm.slane %v1552_v25, 0 }
 0x1d3   : > { %v1431_v35 = vadd.f32 %v1413_v13, %v1384_v32  ;;  %v1545_v13 = vld.sshfl [vmem:[#allocation1 + $0x10] sm:$0xff pattern:$0x75316420] }
 0x1d4   : > { %v1432_v38 = vadd.f32 %v1426_v15, %v1385_v34  ;;  %v1609_v34 = vld [vmem:[#allocation2 + $0x2] sm:$0x3f] }
 0x1d5   : > { %v1478_v14 = vadd.f32 %v1460_v42, %v1431_v35 }
 0x1d8   : > { %v1473_v12 = vpop.f32.mrf.mxu2 }
 0x1d9   : > { %v1494_v16 = vpop.f32.mrf.mxu3  ;;  %v1449_v17 = vpop.f32.mrf.mxu0  ;;  %v1479_v28 = vadd.f32 %v1473_v12, %v1432_v38 }
 0x1da   : > { %v1462_v18 = vpop.f32.mrf.mxu1  ;;  %v1524_v0 = vadd.f32 %v1494_v16, %v1477_v31 }
 0x1dc   : > { %v1533_v29 = vadd.f32 %v1531_v27, %v1524_v0 }
 0x1de   : > { %v1549_v15 = vadd.f32 %v1543_v49, %v1533_v29 }
 0x1e0   : > { %v1475_v37 = vpop.f32.mrf.mxu2  ;;  %v1560_v0 = vmul.f32 %v1554_v41, %v1549_v15 }
 0x1e1   : > { %v1496_v36 = vpop.f32.mrf.mxu3  ;;  %v1507_v46 = vpop.f32.mrf.mxu0 }
 0x1e2   : > { %v1520_v47 = vpop.f32.mrf.mxu1  ;;  %v1525_v7 = vadd.f32 %v1507_v46, %v1478_v14 }
 0x1e3   : > { %v1526_v6 = vadd.f32 %v1520_v47, %v1479_v28 }
 0x1e4   : > { %v1534_v42 = vadd.f32 %v1531_v27, %v1525_v7 }
 0x1e5   : > { %v1535_v44 = vadd.f32 %v1531_v27, %v1526_v6 }
 0x1e6   : > { %v1550_v55 = vadd.f32 %v1544_v54, %v1534_v42 }
 0x1e7   : > { %v1551_v58 = vadd.f32 %v1545_v13, %v1535_v44 }
 0x1e8   : > { %v1561_v63 = vmul.f32 %v1555_v43, %v1550_v55 }
 0x1e9   : > { %v1562_v4 = vmul.f32 %v1556_v48, %v1551_v58  ;;  %v1509_v5 = vpop.f32.mrf.mxu0 }
 0x1ea   : > { %v1522_v12 = vpop.f32.mrf.mxu1  ;;  %v1565_v16 = vrot.slane %v1561_v63, 4  ;;  %v1592_v17 = vpack.c.bf16 %v1561_v63, %v1560_v0 }
 0x1eb   : > { %1570 = vst [vmem:[%s392_s28 + $0x8] sm:$0x7] %v1562_v4  ;;  %v1593_v18 = vpack.c.bf16 %v1562_v4, %v1562_v4 }
 0x1ec   : > { %v1596_v20 = vrot.slane %v1592_v17, 2  ;;  %v1567_v30 = vsel %vm1566_vm5, %v1560_v0, %v1565_v16 }
 0x1ed   : > { %v1597_v31 = vrot.slane %v1593_v18, 4  ;;  %v1598_v32 = vrot.slane %v1593_v18, 6  ;;  %1569 = vst [vmem:[%s392_s28] sm:$0x77] %v1567_v30 }
 0x1ee   : > { %v1602_v27 = vsel %vm1571_vm9, %v1592_v17, %v1596_v20 }
 0x1ef   : > { %v1606_v35 = vsel %vm1578_vm14, %v1597_v31, %v1598_v32  ;;  %vm3823_vm14 = vmmov %vm3821_vm12 }
 0x1f0   : > { %v1607_v38 = vsel %vm1566_vm5, %v1602_v27, %v1606_v35  ;;  %vm3828_vm5 = vmmov %vm3825_vm1 }
 0x1f1   : > { %v1610_v14 = vsel %vm3441_vm4, %v1607_v38, %v1609_v34  ;;  %vm1648_vm4 = vcmask 1040384  }
 0x1f2   : > { %1611 = vst [vmem:[#allocation2 + $0x2] sm:$0x3f] %v1610_v14  ;;  %v2392_v14 = vld [vmem:[%s3785_s8] sm:$0xff] }
 0x1f9   : > { %v1612_v28 = vld [vmem:[#allocation2] sm:$0xff] }
 0x1fa   : > { %1624 = vst [vmem:[#allocation1] ss:$4 sm:$0xff] %v1612_v28  ;;  %v1961_v43 = vld [vmem:[#allocation2 + $0x2] sm:$0x3f] }
 0x1fb   : > { %v2032_v0 = vld [vmem:[#allocation2 + $0x2] sm:$0xff] }
 0x201   : > { %v1625_v25 = vld.sshfl [vmem:[#allocation1] sm:$0xff pattern:$0x73625140]  ;;  %v1627_v29 = vld.sshfl [vmem:[#allocation1 + $0x8] sm:$0xff pattern:$0x73625140] }
 0x202   : > { %v1629_v37 = vld.sshfl [vmem:[#allocation1 + $0x10] sm:$0xff pattern:$0x73625140]  ;;  %v1631_v36 = vld.sshfl [vmem:[#allocation1 + $0x18] sm:$0xff pattern:$0x73625140]  ;;  %1635 = vrot.lane.b32.xlu1 %v1627_v29, %s2991_s19  ;;  %1633 = vrot.lane.b32.xlu0 %v1625_v25, %s2991_s19 }
 0x203   : > { %1707 = vst [vmem:[#allocation1] ss:$4 sm:$0xff] %v1612_v28  ;;  %1637 = vrot.lane.b32.xlu2 %v1629_v37, %s2991_s19  ;;  %v1093_v25 = vld [vmem:[%s3783_s6] sm:$0xff]  ;;  %v1094_v29 = vld [vmem:[%s3783_s6 + $0x8] sm:$0xff] }
 0x20a   : > { %v1708_v49 = vld.sshfl [vmem:[#allocation1] sm:$0xff pattern:$0x73625140]  ;;  %v1710_v46 = vld.sshfl [vmem:[#allocation1 + $0x8] sm:$0xff pattern:$0x73625140]  ;;  %1639 = vrot.lane.b32.xlu0 %v1631_v36, %s2991_s19 }
 0x20b   : > { %v1712_v19 = vld.sshfl [vmem:[#allocation1 + $0x10] sm:$0xff pattern:$0x73625140]  ;;  %v1714_v47 = vld.sshfl [vmem:[#allocation1 + $0x18] sm:$0xff pattern:$0x73625140]  ;;  %1718 = vrot.lane.b32.xlu1 %v1710_v46, %s2992_s20 }
 0x20c   : > { %1791 = vst [vmem:[#allocation1] ss:$4 sm:$0xff] %v1612_v28  ;;  %1720 = vrot.lane.b32.xlu2 %v1712_v19, %s2992_s20 }
 0x212   : > { %1722 = vrot.lane.b32.xlu0 %v1714_v47, %s2992_s20 }
 0x213   : > { %v1792_v7 = vld.sshfl [vmem:[#allocation1] sm:$0xff pattern:$0x73625140]  ;;  %v1794_v54 = vld.sshfl [vmem:[#allocation1 + $0x8] sm:$0xff pattern:$0x73625140]  ;;  %1716 = vrot.lane.b32.xlu1 %v1708_v49, %s2992_s20 }
 0x214   : > { %v1796_v6 = vld.sshfl [vmem:[#allocation1 + $0x10] sm:$0xff pattern:$0x73625140]  ;;  %v1798_v41 = vld.sshfl [vmem:[#allocation1 + $0x18] sm:$0xff pattern:$0x73625140]  ;;  %1800 = vrot.lane.b32.xlu2 %v1792_v7, %s2993_s21 }
 0x215   : > { %1881 = vst [vmem:[#allocation1] ss:$4 sm:$0xff] %v1612_v28  ;;  %v3000_v49 = vmov 65535  }
 0x216   : > { %v1649_v46 = vsel %vm1648_vm4, 4294967295, %v3000_v49  ;;  %vm3829_vm4 = vmmov %vm3826_vm10 }
 0x217   : > { %v3511_v7 = vsel %vm1571_vm9, %v1649_v46, 0  ;;  %vm3820_vm9 = vmmov %vm3818_vm7 }
 0x21a   : > { %1802 = vrot.lane.b32.xlu0 %v1794_v54, %s2993_s21 }
 0x21b   : > { %1804 = vrot.lane.b32.xlu1 %v1796_v6, %s2993_s21 }
 0x21c   : > { %v1882_v13 = vld.sshfl [vmem:[#allocation1] sm:$0xff pattern:$0x73625140]  ;;  %v1884_v15 = vld.sshfl [vmem:[#allocation1 + $0x8] sm:$0xff pattern:$0x73625140]  ;;  %1806 = vrot.lane.b32.xlu2 %v1798_v41, %s2993_s21 }
 0x21d   : > { %v1886_v42 = vld.sshfl [vmem:[#allocation1 + $0x10] sm:$0xff pattern:$0x73625140]  ;;  %v1888_v44 = vld.sshfl [vmem:[#allocation1 + $0x18] sm:$0xff pattern:$0x73625140] }
 0x21e   : > { %1971 = vst [vmem:[#allocation1] ss:$4 sm:$0xff] %v1961_v43 }
 0x222   : > { %1890 = vrot.lane.b32.xlu0 %v1882_v13, %s2994_s22  ;;  %v2927_v13 = vld [vmem:[%s3782_s5 + $0x8] sm:$0xff] }
 0x223   : > { %1892 = vrot.lane.b32.xlu1 %v1884_v15, %s2994_s22 }
 0x224   : > { %1894 = vrot.lane.b32.xlu2 %v1886_v42, %s2994_s22 }
 0x225   : > { %v3478_v48 = vld.sshfl [vmem:[#allocation1] sm:$0xff pattern:$0x73625140]  ;;  %v3480_v55 = vld.sshfl [vmem:[#allocation1 + $0x8] sm:$0xff pattern:$0x73625140] }
 0x226   : > { %v3482_v58 = vld.sshfl [vmem:[#allocation1 + $0x10] sm:$0xff pattern:$0x73625140]  ;;  %v1978_v49 = vand.u32 %v3478_v48, %v3511_v7 }
 0x227   : > { %2042 = vst [vmem:[#allocation1] ss:$4 sm:$0xff] %v2032_v0  ;;  %v1982_v48 = vand.u32 %v3482_v58, %v3511_v7 }
 0x22a   : > { %1896 = vrot.lane.b32.xlu0 %v1888_v44, %s2994_s22 }
 0x22e   : > { %v2043_v63 = vld.sshfl [vmem:[#allocation1] sm:$0xff pattern:$0x73625140]  ;;  %v2045_v4 = vld.sshfl [vmem:[#allocation1 + $0x8] sm:$0xff pattern:$0x73625140] }
 0x22f   : > { %v2047_v5 = vld.sshfl [vmem:[#allocation1 + $0x10] sm:$0xff pattern:$0x73625140]  ;;  %v2049_v12 = vld.sshfl [vmem:[#allocation1 + $0x18] sm:$0xff pattern:$0x73625140]  ;;  %2053 = vrot.lane.b32.xlu1 %v2045_v4, %s2995_s23 }
 0x230   : > { %2132 = vst [vmem:[#allocation1] ss:$4 sm:$0xff] %v2032_v0  ;;  %2055 = vrot.lane.b32.xlu2 %v2047_v5, %s2995_s23 }
 0x232   : > { %2057 = vrot.lane.b32.xlu0 %v2049_v12, %s2995_s23 }
 0x237   : > { %v2133_v16 = vld.sshfl [vmem:[#allocation1] sm:$0xff pattern:$0x73625140]  ;;  %v2135_v17 = vld.sshfl [vmem:[#allocation1 + $0x8] sm:$0xff pattern:$0x73625140]  ;;  %2051 = vrot.lane.b32.xlu1 %v2043_v63, %s2995_s23 }
 0x238   : > { %v2137_v18 = vld.sshfl [vmem:[#allocation1 + $0x10] sm:$0xff pattern:$0x73625140]  ;;  %v2139_v20 = vld.sshfl [vmem:[#allocation1 + $0x18] sm:$0xff pattern:$0x73625140]  ;;  %2141 = vrot.lane.b32.xlu2 %v2133_v16, %s2996_s24 }
 0x239   : > { %2222 = vst [vmem:[#allocation1] ss:$4 sm:$0xff] %v2032_v0 }
 0x23a   : > { %2143 = vrot.lane.b32.xlu0 %v2135_v17, %s2996_s24 }
 0x23f   : > { %2145 = vrot.lane.b32.xlu1 %v2137_v18, %s2996_s24 }
 0x240   : > { %v2229_v30 = vld.sshfl [vmem:[#allocation1 + $0x18] sm:$0xff pattern:$0x73625140]  ;;  %2147 = vrot.lane.b32.xlu2 %v2139_v20, %s2996_s24  ;;  %v2227_v31 = vld.sshfl [vmem:[#allocation1 + $0x10] sm:$0xff pattern:$0x73625140] }
 0x241   : > { %v2225_v32 = vld.sshfl [vmem:[#allocation1 + $0x8] sm:$0xff pattern:$0x73625140]  ;;  %v2223_v34 = vld.sshfl [vmem:[#allocation1] sm:$0xff pattern:$0x73625140] }
 0x242   : > { %2231 = vrot.lane.b32.xlu0 %v2223_v34, %s2997_s25  ;;  %2312 = vst [vmem:[#allocation1] ss:$4 sm:$0xff] %v2032_v0 }
 0x247   : > { %2233 = vrot.lane.b32.xlu1 %v2225_v32, %s2997_s25  ;;  %v2926_v32 = vld [vmem:[%s3782_s5] sm:$0xff] }
 0x248   : > { %2235 = vrot.lane.b32.xlu2 %v2227_v31, %s2997_s25 }
 0x249   : > { %v2313_v27 = vld.sshfl [vmem:[#allocation1] sm:$0xff pattern:$0x73625140]  ;;  %v2315_v35 = vld.sshfl [vmem:[#allocation1 + $0x8] sm:$0xff pattern:$0x73625140] }
 0x24a   : > { %2321 = vrot.lane.b32.xlu0 %v2313_v27, %s2998_s26  ;;  %v2317_v38 = vld.sshfl [vmem:[#allocation1 + $0x10] sm:$0xff pattern:$0x73625140]  ;;  %v2319_v28 = vld.sshfl [vmem:[#allocation1 + $0x18] sm:$0xff pattern:$0x73625140] }
 0x24f   : > { %2323 = vrot.lane.b32.xlu1 %v2315_v35, %s2998_s26 }
 0x250   : > { %2325 = vrot.lane.b32.xlu2 %v2317_v38, %s2998_s26 }
 0x252   : > { %2237 = vrot.lane.b32.xlu0 %v2229_v30, %s2997_s25 }
 0x257   : > { %2327 = vrot.lane.b32.xlu1 %v2319_v28, %s2998_s26 }
 0x258   : > { %2396 = vperm.xlu2 %2956, %v2392_v14  }
 0x25d   : > { %v1638_v37 = vpop.permute.xlu2 %1637 }
 0x25f   : > { %1097 = vperm.xlu1 %2958, %v1093_v25  }
 0x260   : > { %1102 = vperm.xlu2 %2956, %v1094_v29  }
 0x266   : > { %v1721_v36 = vpop.permute.xlu2 %1720 }
 0x26e   : > { %v1801_v15 = vpop.permute.xlu2 %1800 }
 0x274   : > { %v1636_v19 = vpop.permute.xlu1 %1635  ;;  %v1634_v47 = vpop.permute.xlu0 %1633 }
 0x275   : > { %v1642_v54 = vsel %vm432_vm2, %v1636_v19, %v1638_v37  ;;  %v1641_v6 = vsel %vm432_vm2, %v1634_v47, %v1636_v19 }
 0x276   : > { %v1655_v41 = vand.u32 %v3511_v7, %v1642_v54  ;;  %v1652_v43 = vand.u32 %v3511_v7, %v1641_v6  ;;  %v1807_v16 = vpop.permute.xlu2 %1806 }
 0x278   : > { %1667 = vmatpush.bf16.msrb.mxu2 %v1652_v43  ;;  %1681 = vmatpush.bf16.msrb.mxu3 %v1655_v41  ;;  %v1980_v43 = vand.u32 %v3480_v55, %v3511_v7 }
 0x27b   : > { %2825 = vmatmul.msk.bf16.vlgmr.msrb.gmra.mxu2 %vm1644_vm6, %v2927_v13  ;;  %2826 = vmatmul.msk.bf16.vlgmr.msrb.gmra.mxu3 %vm1644_vm6, %v2927_v13 }
 0x27c   : > { %v1640_v42 = vpop.permute.xlu0 %1639 }
 0x27d   : > { %v1643_v44 = vsel %vm432_vm2, %v1638_v37, %v1640_v42  ;;  %v1719_v0 = vpop.permute.xlu1 %1718 }
 0x27e   : > { %v1658_v63 = vand.u32 %v3511_v7, %v1643_v44  ;;  %v1725_v4 = vsel %vm498_vm0, %v1719_v0, %v1721_v36  ;;  %v1895_v25 = vpop.permute.xlu2 %1894 }
 0x27f   : > { %v1734_v5 = vand.u32 %v1725_v4, %v3511_v7 }
 0x280   : > { %1695 = vmatpush.bf16.msra.mxu0 %v1658_v63 }
 0x281   : > { %1760 = vmatpush.bf16.msra.mxu2 %v1734_v5 }
 0x283   : > { %2827 = vmatmul.msk.bf16.vlgmr.msra.gmra.mxu0 %vm1644_vm6, %v2927_v13  ;;  %v2929_v13 = vld [vmem:[%s3782_s5 + $0x18] sm:$0xff] }
 0x284   : > { %v1723_v12 = vpop.permute.xlu0 %1722 }
 0x285   : > { %v1726_v17 = vsel %vm498_vm0, %v1721_v36, %v1723_v12  ;;  %v1717_v18 = vpop.permute.xlu1 %1716  ;;  %v2928_v36 = vld [vmem:[%s3782_s5 + $0x10] sm:$0xff] }
 0x286   : > { %v1737_v20 = vand.u32 %v1726_v17, %v3511_v7  ;;  %v1724_v30 = vsel %vm498_vm0, %v1717_v18, %v1719_v0  ;;  %vm3815_vm0 = vcmask 7168   ;;  %v2930_v17 = vld [vmem:[%s3782_s5 + $0x20] sm:$0xff] }
 0x287   : > { %v1731_v31 = vand.u32 %v1724_v30, %v3511_v7  ;;  %vm3816_vm2 = vmmov %vm3815_vm0 }
 0x288   : > { %1774 = vmatpush.bf16.msra.mxu3 %v1737_v20 }
 0x289   : > { %1746 = vmatpush.bf16.msra.mxu1 %v1731_v31 }
 0x28b   : > { %2833 = vmatmul.msk.bf16.vlgmr.msra.gmra.mxu2 %vm1644_vm6, %v2926_v32  ;;  %2834 = vmatmul.msk.bf16.vlgmr.msra.gmra.mxu3 %vm1644_vm6, %v2926_v32 }
 0x28c   : > { %2832 = vmatmul.msk.bf16.vlgmr.msra.gmra.mxu1 %vm1644_vm6, %v2926_v32  ;;  %v1803_v34 = vpop.permute.xlu0 %1802 }
 0x28d   : > { %v1805_v27 = vpop.permute.xlu1 %1804  ;;  %v1808_v35 = vsel %vm566_vm3, %v1801_v15, %v1803_v34  ;;  %v2056_v15 = vpop.permute.xlu2 %2055 }
 0x28e   : > { %v1810_v38 = vsel %vm566_vm3, %v1805_v27, %v1807_v16  ;;  %v1809_v14 = vsel %vm566_vm3, %v1803_v34, %v1805_v27  ;;  %v1815_v28 = vand.u32 %v1808_v35, %v3511_v7  ;;  %vm3817_vm3 = vmmov %vm3815_vm0 }
 0x28f   : > { %v1821_v29 = vand.u32 %v1810_v38, %v3511_v7  ;;  %v1818_v37 = vand.u32 %v1809_v14, %v3511_v7 }
 0x290   : > { %1830 = vmatpush.bf16.msrb.mxu0 %v1815_v28 }
 0x291   : > { %1844 = vmatpush.bf16.msrb.mxu1 %v1818_v37  ;;  %1858 = vmatpush.bf16.msrb.mxu2 %v1821_v29 }
 0x293   : > { %2841 = vmatmul.msk.bf16.vlgmr.msrb.gmra.mxu0 %vm1644_vm6, %v2928_v36 }
 0x294   : > { %v1891_v46 = vpop.permute.xlu0 %1890 }
 0x295   : > { %1991 = vmatpush.bf16.msra.mxu2 %v1978_v49  ;;  %v1893_v19 = vpop.permute.xlu1 %1892  ;;  %v2142_v63 = vpop.permute.xlu2 %2141 }
 0x296   : > { %v1899_v47 = vsel %vm3815_vm0, %v1893_v19, %v1895_v25  ;;  %v1898_v54 = vsel %vm3816_vm2, %v1891_v46, %v1893_v19 }
 0x297   : > { %v1908_v6 = vand.u32 %v1899_v47, %v3511_v7  ;;  %v1905_v41 = vand.u32 %v1898_v54, %v3511_v7 }
 0x299   : > { %1920 = vmatpush.bf16.msrb.mxu3 %v1905_v41  ;;  %1934 = vmatpush.bf16.msra.mxu0 %v1908_v6  ;;  %v2932_v41 = vld [vmem:[%s3782_s5 + $0x30] sm:$0xff] }
 0x29b   : > { %2843 = vmatmul.msk.bf16.vlgmr.msrb.gmra.mxu2 %vm1644_vm6, %v2928_v36 }
 0x29c   : > { %2842 = vmatmul.msk.bf16.vlgmr.msrb.gmra.mxu1 %vm1644_vm6, %v2928_v36  ;;  %2850 = vmatmul.msk.bf16.vlgmr.msrb.gmra.mxu3 %vm1644_vm6, %v2929_v13  ;;  %v1897_v42 = vpop.permute.xlu0 %1896  ;;  %v2931_v36 = vld [vmem:[%s3782_s5 + $0x28] sm:$0xff] }
 0x29d   : > { %2005 = vmatpush.bf16.msra.mxu3 %v1980_v43  ;;  %2019 = vmatpush.bf16.msrb.mxu0 %v1982_v48  ;;  %v1900_v55 = vsel %vm3817_vm3, %v1895_v25, %v1897_v42  ;;  %v2148_v32 = vpop.permute.xlu2 %2147 }
 0x29e   : > { %v1911_v58 = vand.u32 %v1900_v55, %v3511_v7 }
 0x2a0   : > { %1948 = vmatpush.bf16.msra.mxu1 %v1911_v58  ;;  %v2393_v58 = vld [vmem:[%s3785_s8 + $0x8] sm:$0xff] }
 0x2a1   : > { %v2054_v44 = vpop.permute.xlu1 %2053  ;;  %2401 = vperm.xlu0 %2957, %v2393_v58  }
 0x2a2   : > { %v2060_v0 = vsel %vm3818_vm7, %v2054_v44, %v2056_v15 }
 0x2a3   : > { %v2069_v4 = vand.u32 %v2060_v0, %v3511_v7  ;;  %2851 = vmatmul.msk.bf16.vlgmr.msra.gmra.mxu0 %vm1644_vm6, %v2929_v13 }
 0x2a4   : > { %v2058_v5 = vpop.permute.xlu0 %2057 }
 0x2a5   : > { %2095 = vmatpush.bf16.msrb.mxu2 %v2069_v4  ;;  %v2061_v12 = vsel %vm3819_vm8, %v2056_v15, %v2058_v5  ;;  %v2236_v37 = vpop.permute.xlu2 %2235  ;;  %v2933_v4 = vld [vmem:[%s3782_s5 + $0x38] sm:$0xff] }
 0x2a6   : > { %v2072_v16 = vand.u32 %v2061_v12, %v3511_v7 }
 0x2a8   : > { %2109 = vmatpush.bf16.msrb.mxu3 %v2072_v16 }
 0x2a9   : > { %v2052_v18 = vpop.permute.xlu1 %2051 }
 0x2aa   : > { %v2059_v20 = vsel %vm3820_vm9, %v2052_v18, %v2054_v44 }
 0x2ab   : > { %v2066_v30 = vand.u32 %v2059_v20, %v3511_v7  ;;  %2859 = vmatmul.msk.bf16.vlgmr.msra.gmra.mxu2 %vm1644_vm6, %v2930_v17 }
 0x2ac   : > { %2852 = vmatmul.msk.bf16.vlgmr.msra.gmra.mxu1 %vm1644_vm6, %v2929_v13  ;;  %2860 = vmatmul.msk.bf16.vlgmr.msra.gmra.mxu3 %vm1644_vm6, %v2930_v17  ;;  %v2144_v31 = vpop.permute.xlu0 %2143 }
 0x2ad   : > { %2081 = vmatpush.bf16.msrb.mxu1 %v2066_v30  ;;  %v2149_v34 = vsel %vm3821_vm12, %v2142_v63, %v2144_v31  ;;  %v2326_v43 = vpop.permute.xlu2 %2325 }
 0x2ae   : > { %v2156_v27 = vand.u32 %v2149_v34, %v3511_v7 }
 0x2b0   : > { %2171 = vmatpush.bf16.msra.mxu0 %v2156_v27 }
 0x2b1   : > { %v2146_v35 = vpop.permute.xlu1 %2145 }
 0x2b2   : > { %v2151_v38 = vsel %vm3822_vm13, %v2146_v35, %v2148_v32  ;;  %v2150_v14 = vsel %vm3823_vm14, %v2144_v31, %v2146_v35 }
 0x2b3   : > { %v2162_v28 = vand.u32 %v2151_v38, %v3511_v7  ;;  %v2159_v25 = vand.u32 %v2150_v14, %v3511_v7  ;;  %2861 = vmatmul.msk.bf16.vlgmr.msrb.gmra.mxu0 %vm1644_vm6, %v2930_v17  ;;  %v2934_v17 = vld [vmem:[%s3782_s5 + $0x40] sm:$0xff] }
 0x2b4   : > { %v2232_v29 = vpop.permute.xlu0 %2231 }
 0x2b5   : > { %2185 = vmatpush.bf16.msra.mxu1 %v2159_v25  ;;  %2199 = vmatpush.bf16.msra.mxu2 %v2162_v28 }
 0x2b9   : > { %v2234_v49 = vpop.permute.xlu1 %2233 }
 0x2ba   : > { %v2240_v46 = vsel %vm3824_vm15, %v2234_v49, %v2236_v37  ;;  %v2239_v19 = vsel %vm3825_vm1, %v2232_v29, %v2234_v49 }
 0x2bb   : > { %v2249_v47 = vand.u32 %v2240_v46, %v3511_v7  ;;  %v2246_v54 = vand.u32 %v2239_v19, %v3511_v7  ;;  %2869 = vmatmul.msk.bf16.vlgmr.msrb.gmra.mxu2 %vm1644_vm6, %v2931_v36 }
 0x2bc   : > { %2868 = vmatmul.msk.bf16.vlgmr.msrb.gmra.mxu1 %vm1644_vm6, %v2931_v36  ;;  %2870 = vmatmul.msk.bf16.vlgmr.msrb.gmra.mxu3 %vm1644_vm6, %v2931_v36  ;;  %v2322_v6 = vpop.permute.xlu0 %2321 }
 0x2bd   : > { %2261 = vmatpush.bf16.msra.mxu3 %v2246_v54  ;;  %2275 = vmatpush.bf16.msrb.mxu0 %v2249_v47 }
 0x2c1   : > { %v2324_v48 = vpop.permute.xlu1 %2323 }
 0x2c2   : > { %v2330_v13 = vsel %vm3826_vm10, %v2324_v48, %v2326_v43  ;;  %v2329_v15 = vsel %vm3827_vm11, %v2322_v6, %v2324_v48 }
 0x2c3   : > { %v2339_v42 = vand.u32 %v2330_v13, %v3511_v7  ;;  %v2336_v55 = vand.u32 %v2329_v15, %v3511_v7  ;;  %2877 = vmatmul.msk.bf16.vlgmr.msra.gmra.mxu0 %vm1644_vm6, %v2932_v41 }
 0x2c4   : > { %v2238_v44 = vpop.permute.xlu0 %2237 }
 0x2c5   : > { %2351 = vmatpush.bf16.msrb.mxu2 %v2336_v55  ;;  %2365 = vmatpush.bf16.msrb.mxu3 %v2339_v42  ;;  %v2241_v0 = vsel %vm3828_vm5, %v2236_v37, %v2238_v44 }
 0x2c6   : > { %v2252_v63 = vand.u32 %v2241_v0, %v3511_v7 }
 0x2c8   : > { %2289 = vmatpush.bf16.msrb.mxu1 %v2252_v63 }
 0x2c9   : > { %v2328_v5 = vpop.permute.xlu1 %2327 }
 0x2ca   : > { %v2331_v12 = vsel %vm3829_vm4, %v2326_v43, %v2328_v5 }
 0x2cb   : > { %v2342_v16 = vand.u32 %v2331_v12, %v3511_v7  ;;  %2879 = vmatmul.msk.bf16.vlgmr.msra.gmra.mxu2 %vm1644_vm6, %v2932_v41 }
 0x2cc   : > { %2878 = vmatmul.msk.bf16.vlgmr.msra.gmra.mxu1 %vm1644_vm6, %v2932_v41  ;;  %2886 = vmatmul.msk.bf16.vlgmr.msra.gmra.mxu3 %vm1644_vm6, %v2933_v4 }
 0x2cd   : > { %2379 = vmatpush.bf16.msra.mxu0 %v2342_v16 }
 0x2d3   : > { %2887 = vmatmul.msk.bf16.vlgmr.msrb.gmra.mxu0 %vm1644_vm6, %v2933_v4 }
 0x2db   : > { %2895 = vmatmul.msk.bf16.vlgmr.msrb.gmra.mxu2 %vm1644_vm6, %v2934_v17 }
 0x2dc   : > { %2888 = vmatmul.msk.bf16.vlgmr.msrb.gmra.mxu1 %vm1644_vm6, %v2933_v4  ;;  %2896 = vmatmul.msk.bf16.vlgmr.msrb.gmra.mxu3 %vm1644_vm6, %v2934_v17 }
 0x2e3   : > { %2897 = vmatmul.msk.bf16.vlgmr.msra.gmra.mxu0 %vm1644_vm6, %v2934_v17 }
 0x2fe   : > { %v1669_v7 = vpop.f32.mrf.mxu2  ;;  %v1683_v18 = vpop.f32.mrf.mxu3 }
 0x300   : > { %v1697_v20 = vpop.f32.mrf.mxu0 }
 0x306   : > { %v1671_v30 = vpop.f32.mrf.mxu2  ;;  %v1685_v31 = vpop.f32.mrf.mxu3 }
 0x308   : > { %v1699_v32 = vpop.f32.mrf.mxu0 }
 0x309   : > { %v1748_v34 = vpop.f32.mrf.mxu1 }
 0x30a   : > { %v1749_v27 = vadd.f32 %v1748_v34, %v1669_v7 }
 0x30e   : > { %v1762_v35 = vpop.f32.mrf.mxu2  ;;  %v1776_v38 = vpop.f32.mrf.mxu3 }
 0x30f   : > { %v1763_v14 = vadd.f32 %v1762_v35, %v1683_v18  ;;  %v1777_v28 = vadd.f32 %v1776_v38, %v1697_v20 }
 0x310   : > { %v1832_v25 = vpop.f32.mrf.mxu0 }
 0x311   : > { %v1750_v29 = vpop.f32.mrf.mxu1  ;;  %v1865_v37 = vadd.f32 %v1832_v25, %v1749_v27 }
 0x312   : > { %v1751_v36 = vadd.f32 %v1750_v29, %v1671_v30 }
 0x316   : > { %v1764_v49 = vpop.f32.mrf.mxu2  ;;  %v1778_v46 = vpop.f32.mrf.mxu3 }
 0x317   : > { %v1765_v19 = vadd.f32 %v1764_v49, %v1685_v31  ;;  %v1779_v47 = vadd.f32 %v1778_v46, %v1699_v32 }
 0x318   : > { %v1834_v54 = vpop.f32.mrf.mxu0 }
 0x319   : > { %v1868_v6 = vadd.f32 %v1834_v54, %v1751_v36  ;;  %v1846_v41 = vpop.f32.mrf.mxu1 }
 0x31a   : > { %v1866_v49 = vadd.f32 %v1846_v41, %v1763_v14 }
 0x31e   : > { %v1860_v43 = vpop.f32.mrf.mxu2 }
 0x31f   : > { %v1922_v48 = vpop.f32.mrf.mxu3  ;;  %v1867_v46 = vadd.f32 %v1860_v43, %v1777_v28 }
 0x320   : > { %v1936_v13 = vpop.f32.mrf.mxu0  ;;  %v1955_v54 = vadd.f32 %v1922_v48, %v1865_v37 }
 0x321   : > { %v1848_v15 = vpop.f32.mrf.mxu1  ;;  %v1956_v57 = vadd.f32 %v1936_v13, %v1866_v49 }
 0x322   : > { %v1869_v24 = vadd.f32 %v1848_v15, %v1765_v19 }
 0x326   : > { %v1862_v42 = vpop.f32.mrf.mxu2 }
 0x327   : > { %v1924_v55 = vpop.f32.mrf.mxu3  ;;  %v1870_v22 = vadd.f32 %v1862_v42, %v1779_v47 }
 0x328   : > { %v1938_v58 = vpop.f32.mrf.mxu0  ;;  %v1958_v21 = vadd.f32 %v1924_v55, %v1868_v6 }
 0x329   : > { %v1950_v44 = vpop.f32.mrf.mxu1  ;;  %v1959_v37 = vadd.f32 %v1938_v58, %v1869_v24 }
 0x32a   : > { %v1957_v3 = vadd.f32 %v1950_v44, %v1867_v46 }
 0x32e   : > { %v1993_v0 = vpop.f32.mrf.mxu2 }
 0x32f   : > { %v2007_v63 = vpop.f32.mrf.mxu3  ;;  %v2026_v2 = vadd.f32 %v1993_v0, %v1955_v54 }
 0x330   : > { %v2021_v4 = vpop.f32.mrf.mxu0  ;;  %v2027_v53 = vadd.f32 %v2007_v63, %v1956_v57 }
 0x331   : > { %v1952_v5 = vpop.f32.mrf.mxu1  ;;  %v2028_v51 = vadd.f32 %v2021_v4, %v1957_v3  ;;  %v2397_v3 = vpop.permute.xlu2 %2396  ;;  %v622_v4 = vadd.f32 %v3342_v62, %v3336_v59  ;;  %v3830_v59 = vld [vmem:[#allocation3_spill] sm:$0xff] }
 0x332   : > { %v1960_v48 = vadd.f32 %v1952_v5, %v1870_v22  ;;  %v623_v5 = vadd.f32 %v3355_v8, %v3338_v60  ;;  %v3831_v8 = vld [vmem:[#allocation4_spill] sm:$0xff] }
 0x336   : > { %v1995_v12 = vpop.f32.mrf.mxu2 }
 0x337   : > { %v2009_v16 = vpop.f32.mrf.mxu3  ;;  %v2029_v13 = vadd.f32 %v1995_v12, %v1958_v21  ;;  %v621_v21 = vadd.f32 %v3340_v61, %v3320_v45 }
 0x338   : > { %v2023_v17 = vpop.f32.mrf.mxu0 }
 0x339   : > { %v2083_v7 = vpop.f32.mrf.mxu1 }
 0x33a   : > { %v2116_v50 = vadd.f32 %v2083_v7, %v2026_v2  ;;  %v2030_v2 = vadd.f32 %v2009_v16, %v1959_v37  ;;  %v695_v7 = vadd.f32 %v3357_v9, %v621_v21  ;;  %v3836_v37 = vld [vmem:[#allocation9_spill] sm:$0xff]  ;;  %v3663_v21 = vld [vmem:[%s3070_s18 + $0xc] sm:$0xf] }
 0x33c   : > { %v774_v62 = vadd.f32 %v3830_v59, %v695_v7  ;;  %v2416_v59 = vunpack.c.l.bf16 %v3663_v21 }
 0x33e   : > { %v2097_v18 = vpop.f32.mrf.mxu2 }
 0x33f   : > { %v2111_v20 = vpop.f32.mrf.mxu3  ;;  %v2117_v40 = vadd.f32 %v2097_v18, %v2027_v53 }
 0x340   : > { %v2173_v30 = vpop.f32.mrf.mxu0  ;;  %v2118_v33 = vadd.f32 %v2111_v20, %v2028_v51  ;;  %v2031_v51 = vadd.f32 %v2023_v17, %v1960_v48  ;;  %v2402_v17 = vpop.permute.xlu0 %2401 }
 0x341   : > { %v2085_v31 = vpop.f32.mrf.mxu1  ;;  %v2206_v26 = vadd.f32 %v2173_v30, %v2116_v50 }
 0x342   : > { %v2119_v50 = vadd.f32 %v2085_v31, %v2029_v13  ;;  %v3837_v13 = vld [vmem:[#allocation10_spill] sm:$0xff] }
 0x346   : > { %v2099_v32 = vpop.f32.mrf.mxu2 }
 0x347   : > { %v2113_v34 = vpop.f32.mrf.mxu3  ;;  %v2120_v47 = vadd.f32 %v2099_v32, %v2030_v2  ;;  %v3832_v32 = vld [vmem:[#allocation5_spill] sm:$0xff] }
 0x348   : > { %v2175_v27 = vpop.f32.mrf.mxu0 }
 0x349   : > { %v2187_v35 = vpop.f32.mrf.mxu1 }
 0x34a   : > { %v2207_v23 = vadd.f32 %v2187_v35, %v2117_v40  ;;  %v3833_v35 = vld [vmem:[#allocation6_spill] sm:$0xff] }
 0x34e   : > { %v2201_v38 = vpop.f32.mrf.mxu2 }
 0x34f   : > { %v2263_v25 = vpop.f32.mrf.mxu3  ;;  %v2208_v14 = vadd.f32 %v2201_v38, %v2118_v33  ;;  %v2121_v33 = vadd.f32 %v2113_v34, %v2031_v51  ;;  %v868_v38 = vadd.f32 %v3833_v35, %v774_v62  ;;  %v3650_v51 = vpop.permute.xlu2 %1102 }
 0x350   : > { %v2277_v29 = vpop.f32.mrf.mxu0  ;;  %v2296_v28 = vadd.f32 %v2263_v25, %v2206_v26  ;;  %v2209_v26 = vadd.f32 %v2175_v27, %v2119_v50  ;;  %v1098_v50 = vpop.permute.xlu1 %1097 }
 0x351   : > { %v2189_v36 = vpop.f32.mrf.mxu1  ;;  %v2297_v41 = vadd.f32 %v2277_v29, %v2207_v23 }
 0x352   : > { %v2210_v22 = vadd.f32 %v2189_v36, %v2120_v47 }
 0x356   : > { %v2203_v56 = vpop.f32.mrf.mxu2 }
 0x357   : > { %v2265_v1 = vpop.f32.mrf.mxu3  ;;  %v2211_v42 = vadd.f32 %v2203_v56, %v2121_v33  ;;  %v696_v56 = vadd.f32 %v3359_v10, %v622_v4  ;;  %v3834_v10 = vld [vmem:[#allocation7_spill] sm:$0xff]  ;;  %v3846_v4 = vld [vmem:[#allocation16_spill] sm:$0xff] }
 0x358   : > { %v2279_v52 = vpop.f32.mrf.mxu0  ;;  %v2299_v55 = vadd.f32 %v2265_v1, %v2209_v26  ;;  %v697_v1 = vadd.f32 %v3361_v11, %v623_v5  ;;  %v3835_v11 = vld [vmem:[#allocation8_spill] sm:$0xff]  ;;  %v3657_v26 = vld [vmem:[%s3070_s18 + $0x4] sm:$0xff]  ;;  %v1106_v5 = vadd.f32 %v1098_v50, %v3846_v4 }
 0x359   : > { %v2291_v39 = vpop.f32.mrf.mxu1  ;;  %v2300_v12 = vadd.f32 %v2279_v52, %v2210_v22  ;;  %v775_v52 = vadd.f32 %v3831_v8, %v696_v56 }
 0x35a   : > { %v2298_v44 = vadd.f32 %v2291_v39, %v2208_v14  ;;  %v776_v34 = vadd.f32 %v3832_v32, %v697_v1 }
 0x35b   : > { %v869_v49 = vadd.f32 %v3834_v10, %v775_v52 }
 0x35c   : > { %v870_v46 = vadd.f32 %v3835_v11, %v776_v34 }
 0x35e   : > { %v2353_v43 = vpop.f32.mrf.mxu2 }
 0x35f   : > { %v2386_v57 = vadd.f32 %v2353_v43, %v2296_v28  ;;  %v2367_v0 = vpop.f32.mrf.mxu3 }
 0x360   : > { %v2387_v53 = vadd.f32 %v2367_v0, %v2297_v41  ;;  %v2381_v63 = vpop.f32.mrf.mxu0  ;;  %v942_v41 = vadd.f32 %v3836_v37, %v868_v38 }
 0x361   : > { %v2404_v19 = vadd.f32 %v2397_v3, %v2386_v57  ;;  %v2388_v40 = vadd.f32 %v2381_v63, %v2298_v44  ;;  %v2293_v15 = vpop.f32.mrf.mxu1  ;;  %v943_v44 = vadd.f32 %v3837_v13, %v869_v49  ;;  %v3838_v57 = vld [vmem:[#allocation11_spill] sm:$0xff] }
 0x362   : > { %v2405_v6 = vadd.f32 %v2397_v3, %v2387_v53  ;;  %v2301_v45 = vadd.f32 %v2293_v15, %v2211_v42  ;;  %v944_v0 = vadd.f32 %v3838_v57, %v870_v46  ;;  %v3840_v53 = vld [vmem:[#allocation13_spill] sm:$0xff] }
 0x363   : > { %v2898_v24 = vmul.f32 -1.442695, %v2404_v19  ;;  %v2406_v23 = vadd.f32 %v2397_v3, %v2388_v40  ;;  %v3839_v3 = vld [vmem:[#allocation12_spill] sm:$0xff]  ;;  %v1017_v63 = vadd.f32 %v3840_v53, %v943_v44  ;;  %v3841_v40 = vld [vmem:[#allocation14_spill] sm:$0xff] }
 0x364   : > { %v2899_v39 = vmul.f32 -1.442695, %v2405_v6  ;;  %v1016_v2 = vadd.f32 %v3839_v3, %v942_v41  ;;  %v1018_v47 = vadd.f32 %v3841_v40, %v944_v0  ;;  %v3842_v6 = vld [vmem:[#allocation18_spill] sm:$0xff] }
 0x365   : > { %2959 = vpow2.f32 %v2898_v24  ;;  %v2900_v58 = vmul.f32 -1.442695, %v2406_v23  ;;  %v3843_v24 = vld [vmem:[#allocation19_spill] sm:$0xff] }
 0x366   : > { %2961 = vpow2.f32 %v2899_v39  ;;  %v2355_v16 = vpop.f32.mrf.mxu2  ;;  %v1090_v33 = vadd.f32 %v3842_v6, %v1016_v2  ;;  %v3660_v23 = vadd.f32 %v3843_v24, %v1017_v63  ;;  %v3844_v39 = vld [vmem:[#allocation20_spill] sm:$0xff] }
 0x367   : > { %2963 = vpow2.f32 %v2900_v58  ;;  %v2389_v61 = vadd.f32 %v2355_v16, %v2299_v55  ;;  %v2369_v18 = vpop.f32.mrf.mxu3  ;;  %v3667_v15 = vadd.f32 %v3844_v39, %v1018_v47  ;;  %v3845_v55 = vld [vmem:[#allocation15_spill] sm:$0xff] }
 0x368   : > { %v2390_v20 = vadd.f32 %v2369_v18, %v2300_v12  ;;  %v2383_v30 = vpop.f32.mrf.mxu0  ;;  %v3670_v42 = vadd.f32 %v3650_v51, %v1090_v33  ;;  %v1105_v58 = vadd.f32 %v1098_v50, %v3845_v55  ;;  %v3675_v12 = vld [vmem:[%s3070_s18 + $0x18] sm:$0xff]  ;;  %v1109_v21 = vadd.f32 %v3650_v51, %v3660_v23 }
 0x369   : > { %v2391_v31 = vadd.f32 %v2383_v30, %v2301_v45  ;;  %v2407_v60 = vadd.f32 %v2402_v17, %v2389_v61  ;;  %v2414_v45 = vunpack.c.l.bf16 %v3657_v26  ;;  %v2415_v30 = vunpack.c.h.bf16 %v3657_v26 }
 0x36a   : > { %v2408_v27 = vadd.f32 %v2402_v17, %v2390_v20  ;;  %v2418_v35 = vunpack.c.h.bf16 %v3675_v12  ;;  %v1110_v23 = vadd.f32 %v3650_v51, %v3667_v15 }
 0x36b   : > { %v2960_v9 = vpop.eup %2959  ;;  %v2409_v25 = vadd.f32 %v2402_v17, %v2391_v31  ;;  %v2901_v29 = vmul.f32 -1.442695, %v2407_v60  ;;  %v3847_v17 = vld [vmem:[#allocation17_spill] sm:$0xff]  ;;  %v2417_v60 = vunpack.c.l.bf16 %v3675_v12 }
 0x36c   : > { %v2962_v36 = vpop.eup %2961  ;;  %v3639_v54 = vadd.f32 1.0, %v2960_v9  ;;  %v2902_v14 = vmul.f32 -1.442695, %v2408_v27  ;;  %v3678_v7 = vadd.f32 %v1098_v50, %v3847_v17 }
 0x36d   : > { %v2964_v28 = vpop.eup %2963  ;;  %v3642_v43 = vadd.f32 1.0, %v2962_v36  ;;  %2965 = vpow2.f32 %v2901_v29  ;;  %v2903_v48 = vmul.f32 -1.442695, %v2409_v25 }
 0x36e   : > { %2967 = vrcp.f32 %v3639_v54  ;;  %v3652_v19 = vadd.f32 1.0, %v2964_v28  ;;  %v2453_v61 = vand.u32 2147483647, %v3639_v54  ;;  %v2455_v20 = vand.u32 2147483648, %v3639_v54 }
 0x36f   : > { %2969 = vrcp.f32 %v3642_v43  ;;  %vm2449_vm6 = vweird.f32 %v3639_v54  ;;  %v2468_v32 = vand.u32 2147483647, %v3642_v43  ;;  %v2470_v34 = vand.u32 2147483648, %v3642_v43 }
 0x370   : > { %2971 = vpow2.f32 %v2902_v14  ;;  %vm3696_vm0 = vcmp.eq.f32.partialorder %v2453_v61, 8.507059e+37  ;;  %vm2464_vm2 = vweird.f32 %v3642_v43  ;;  %v2456_v36 = vor.u32 1.1754944e-38, %v2455_v20 }
 0x371   : > { %2973 = vpow2.f32 %v2903_v48  ;;  %v2483_v11 = vand.u32 2147483647, %v3652_v19  ;;  %vm3706_vm8 = vcmp.eq.f32.partialorder %v2468_v32, 8.507059e+37  ;;  %v2471_v28 = vor.u32 1.1754944e-38, %v2470_v34 }
 0x372   : > { %2975 = vrcp.f32 %v3652_v19  ;;  %vm2479_vm12 = vweird.f32 %v3652_v19  ;;  %v2485_v13 = vand.u32 2147483648, %v3652_v19 }
 0x373   : > { %v2966_v22 = vpop.eup %2965  ;;  %vm3722_vm15 = vcmp.eq.f32.partialorder %v2483_v11, 8.507059e+37 }
 0x374   : > { %v2968_v16 = vpop.eup %2967  ;;  %v3682_v18 = vadd.f32 1.0, %v2966_v22  ;;  %v2486_v33 = vor.u32 1.1754944e-38, %v2485_v13 }
 0x375   : > { %v2970_v56 = vpop.eup %2969  ;;  %v2445_v1 = vmul.f32 %v2968_v16, %v3639_v54  ;;  %vm2450_vm3 = vweird.f32 %v2968_v16 }
 0x376   : > { %v2972_v62 = vpop.eup %2971  ;;  %v2460_v31 = vmul.f32 %v2970_v56, %v3642_v43  ;;  %2977 = vrcp.f32 %v3682_v18  ;;  %vm2465_vm7 = vweird.f32 %v2970_v56  ;;  %vm2451_vm9 = vmor %vm2449_vm6, %vm2450_vm3  ;;  %v2498_v53 = vand.u32 2147483647, %v3682_v18 }
 0x377   : > { %v2974_v8 = vpop.eup %2973  ;;  %v2446_v52 = vsub.f32 1.0, %v2445_v1  ;;  %v3694_v27 = vadd.f32 1.0, %v2972_v62  ;;  %vm2466_vm13 = vmor %vm2464_vm2, %vm2465_vm7  ;;  %v2500_v26 = vand.u32 2147483648, %v3682_v18  ;;  %vm2494_vm11 = vweird.f32 %v3682_v18 }
 0x378   : > { %v2976_v9 = vpop.eup %2975  ;;  %v2461_v38 = vsub.f32 1.0, %v2460_v31  ;;  %v3701_v25 = vadd.f32 1.0, %v2974_v8  ;;  %vm3741_vm5 = vcmp.eq.f32.partialorder %v2498_v53, 8.507059e+37 }
 0x379   : > { %v2447_v29 = vmul.f32 %v2968_v16, %v2446_v52  ;;  %v2475_v10 = vmul.f32 %v2976_v9, %v3652_v19  ;;  %2979 = vrcp.f32 %v3694_v27  ;;  %vm2480_vm14 = vweird.f32 %v2976_v9 }
 0x37a   : > { %v2462_v49 = vmul.f32 %v2970_v56, %v2461_v38  ;;  %2981 = vrcp.f32 %v3701_v25  ;;  %vm2481_vm1 = vmor %vm2479_vm12, %vm2480_vm14  ;;  %v2513_v1 = vand.u32 2147483647, %v3694_v27  ;;  %v2528_v8 = vand.u32 2147483647, %v3701_v25 }
 0x37b   : > { %v2448_v46 = vadd.f32 %v2968_v16, %v2447_v29  ;;  %v2476_v37 = vsub.f32 1.0, %v2475_v10  ;;  %v2530_v52 = vand.u32 2147483648, %v3701_v25  ;;  %vm2524_vm7 = vweird.f32 %v3701_v25 }
 0x37c   : > { %v2978_v41 = vpop.eup %2977  ;;  %v2463_v48 = vadd.f32 %v2970_v56, %v2462_v49  ;;  %vm2529_vm12 = vcmp.eq.f32.partialorder %v2528_v8, 8.507059e+37 }
 0x37d   : > { %v2452_v44 = vsel %vm2451_vm9, %v2968_v16, %v2448_v46  ;;  %v2477_v57 = vmul.f32 %v2976_v9, %v2476_v37  ;;  %v2490_v0 = vmul.f32 %v2978_v41, %v3682_v18  ;;  %vm2495_vm10 = vweird.f32 %v2978_v41 }
 0x37e   : > { %v2457_v54 = vsel %vm3696_vm0, %v2456_v36, %v2452_v44  ;;  %v2467_v3 = vsel %vm2466_vm13, %v2970_v56, %v2463_v48  ;;  %vm2496_vm4 = vmor %vm2494_vm11, %vm2495_vm10  ;;  %v2501_v56 = vor.u32 1.1754944e-38, %v2500_v26  ;;  %v2515_v18 = vand.u32 2147483648, %v3694_v27 }
 0x37f   : > { %v2534_v63 = vmul.f32 %v2457_v54, %v1105_v58  ;;  %v2472_v50 = vsel %vm3706_vm8, %v2471_v28, %v2467_v3  ;;  %v2478_v43 = vadd.f32 %v2976_v9, %v2477_v57  ;;  %v2491_v40 = vsub.f32 1.0, %v2490_v0  ;;  %v2980_v47 = vpop.eup %2979 }
 0x380   : > { %v2535_v6 = vmul.f32 %v2472_v50, %v1106_v5  ;;  %v2505_v55 = vmul.f32 %v2980_v47, %v3694_v27  ;;  %v2982_v58 = vpop.eup %2981  ;;  %vm2510_vm6 = vweird.f32 %v2980_v47  ;;  %vm2509_vm0 = vweird.f32 %v3694_v27 }
 0x381   : > { %v2540_v24 = vadd.f32 %v2534_v63, %v2414_v45  ;;  %v2482_v22 = vsel %vm2481_vm1, %v2976_v9, %v2478_v43  ;;  %v2492_v39 = vmul.f32 %v2978_v41, %v2491_v40  ;;  %v2520_v61 = vmul.f32 %v2982_v58, %v3701_v25  ;;  %vm2511_vm3 = vmor %vm2509_vm0, %vm2510_vm6 }
 0x382   : > { %v2541_v4 = vadd.f32 %v2535_v6, %v2415_v30  ;;  %v2487_v16 = vsel %vm3722_vm15, %v2486_v33, %v2482_v22  ;;  %v2506_v45 = vsub.f32 1.0, %v2505_v55  ;;  %vm2525_vm2 = vweird.f32 %v2982_v58 }
 0x383   : > { %2546 = vst [vmem:[%s3732_s12] sm:$0xff] %v2540_v24  ;;  %v2536_v5 = vmul.f32 %v2487_v16, %v3678_v7  ;;  %v2493_v17 = vadd.f32 %v2978_v41, %v2492_v39  ;;  %v2521_v62 = vsub.f32 1.0, %v2520_v61  ;;  %v2516_v27 = vor.u32 1.1754944e-38, %v2515_v18  ;;  %vm2526_vm9 = vmor %vm2524_vm7, %vm2525_vm2 }
 0x384   : > { %2547 = vst [vmem:[%s3732_s12 + $0x8] sm:$0xff] %v2541_v4  ;;  %v2507_v7 = vmul.f32 %v2980_v47, %v2506_v45  ;;  %vm2514_vm8 = vcmp.eq.f32.partialorder %v2513_v1, 8.507059e+37  ;;  %v2531_v10 = vor.u32 1.1754944e-38, %v2530_v52 }
 0x385   : > { %v2542_v20 = vadd.f32 %v2536_v5, %v2416_v59  ;;  %v2497_v30 = vsel %vm2496_vm4, %v2978_v41, %v2493_v17  ;;  %v2522_v34 = vmul.f32 %v2982_v58, %v2521_v62  ;;  %v2413_v59 = vld [vmem:[%s3070_s18 + $0x20] sm:$0xf] }
 0x386   : > { %v2502_v31 = vsel %vm3741_vm5, %v2501_v56, %v2497_v30  ;;  %v2508_v32 = vadd.f32 %v2980_v47, %v2507_v7  ;;  %v2419_v49 = vunpack.c.l.bf16 %v2413_v59 }
 0x387   : > { %2548 = vst [vmem:[%s3732_s12 + $0x10] sm:$0xff] %v2542_v20  ;;  %v2537_v9 = vmul.f32 %v2502_v31, %v3670_v42  ;;  %v2523_v29 = vadd.f32 %v2982_v58, %v2522_v34 }
 0x388   : > { %v2512_v38 = vsel %vm2511_vm3, %v2980_v47, %v2508_v32 }
 0x389   : > { %v2543_v42 = vadd.f32 %v2537_v9, %v2417_v60  ;;  %v2517_v36 = vsel %vm2514_vm8, %v2516_v27, %v2512_v38  ;;  %v2527_v11 = vsel %vm2526_vm9, %v2982_v58, %v2523_v29 }
 0x38a   : > { %v2538_v46 = vmul.f32 %v2517_v36, %v1109_v21  ;;  %v2532_v25 = vsel %vm2529_vm12, %v2531_v10, %v2527_v11 }
 0x38b   : > { %2549 = vst [vmem:[%s3732_s12 + $0x18] sm:$0xff] %v2543_v42  ;;  %v2539_v14 = vmul.f32 %v2532_v25, %v1110_v23 }
 0x38c   : > { %v2544_v28 = vadd.f32 %v2538_v46, %v2418_v35 }
 0x38d   : > { %v2545_v37 = vadd.f32 %v2539_v14, %v2419_v49 }
 0x38e   : > { %2550 = vst [vmem:[%s3732_s12 + $0x20] sm:$0xff] %v2544_v28 }
 0x38f   : > { %2551 = vst [vmem:[%s3732_s12 + $0x28] sm:$0xff] %v2545_v37 }
 0x390 PF: > { %s21_s13 = sadd.s32 1, %s2989_s13  }
 0x391   : > { %p18_p4 = scmp.ge.s32.totalorder %s21_s13, 4  }
 0x393   :  { %20 = sbr.rel (!%p18_p4) target bundleno = 1 (0x1), region = 126 }

</bundles_post_ra>
